<compile_context>
chip_gen: v5e
topology: v5e:2x2
jax: 0.10.0
libtpu: 0.0.40
codegen_flags: <defaults>
</compile_context>

<pallas_src>
import numpy as np
import jax
import jax.numpy as jnp
from jax.experimental import pallas as pl
from jax.experimental.pallas import tpu as pltpu


def _make_fm_kernel(F, D):
    """Builds the per-block kernel: x_ref (TB, F*D) -> o_ref (n_pairs, TB)."""

    def kernel(x_ref, o_ref):
        # Single full-block load + one transpose so batch sits on the lane axis.
        xt = jnp.transpose(x_ref[...])                 # (F*D, TB)
        p = 0
        for i in range(F):                             # static -> fully unrolled
            xi = xt[i * D:(i + 1) * D, :]              # sublane-aligned slab (free)
            for j in range(i, F):                      # row-major triu order (i <= j)
                xj = xt[j * D:(j + 1) * D, :]
                # Full-width VPU multiply; accumulate the D-reduction in f32.
                prod = (xi * xj).astype(jnp.float32)   # (D, TB)
                # Sublane reduction: cross-vreg VPU adds + one intra-vreg reduce,
                # result is naturally lane-dense (TB,).  Written directly (no concat).
                o_ref[p, :] = jnp.sum(prod, axis=0).astype(o_ref.dtype)
                p += 1

    return kernel


def _pick_block_b(B, max_block_b):
    """Batch rows per grid step."""
    if B < 256:
        return B                                   # single block == full array dims
    tb = min(max_block_b, B // 2)                  # >= 2 grid steps (v7x has 2 TCs)
    return max(128, (tb // 128) * 128)             # multiple of 128: clean (8,128) tiling


def fm_forward(x, *, max_block_b=1024):
    """x: [B, F, D] -> r: [B, F*(F+1)/2] (upper triangle incl. diagonal of x @ x^T)."""
    B, F, D = x.shape
    n_pairs = F * (F + 1) // 2
    FD = F * D

    x2 = x.reshape(B, FD)                          # free reshape: lane-dense HBM rows
    TB = _pick_block_b(B, max_block_b)

    itemsize = jnp.dtype(x.dtype).itemsize
    cost = pl.CostEstimate(
        flops=2 * B * n_pairs * D,
        transcendentals=0,
        bytes_accessed=B * FD * itemsize + B * n_pairs * itemsize,
    )

    out_t = pl.pallas_call(
        _make_fm_kernel(F, D),
        out_shape=jax.ShapeDtypeStruct((n_pairs, B), x.dtype),
        grid_spec=pltpu.PrefetchScalarGridSpec(
            num_scalar_prefetch=0,
            grid=(pl.cdiv(B, TB),),
            in_specs=[pl.BlockSpec((TB, FD), lambda b: (b, 0))],
            out_specs=pl.BlockSpec((n_pairs, TB), lambda b: (0, b)),
        ),
        compiler_params=pltpu.CompilerParams(
            dimension_semantics=("parallel",),
            vmem_limit_bytes=32 * 1024 * 1024,
        ),
        cost_estimate=cost,
    )(x2)

    # Tiny (n_pairs, B) -> (B, n_pairs) transpose outside the kernel.
    return jnp.transpose(out_t)


if __name__ == "__main__":
    def reference(x):
        B, F, _ = x.shape
        iu_r, iu_c = np.triu_indices(F)            # trace-time numpy indices
        idx = iu_r * F + iu_c
        z = jnp.einsum("bfd,bgd->bfg", x, x).reshape(B, F * F)
        return z[:, idx]

    F, D = 8, 32
    n_pairs = F * (F + 1) // 2

    # Small shapes consistent with the module: B=2, n_feat F=8, embedding D=32.
    B = 2
    x = jax.random.normal(jax.random.PRNGKey(0), (B, F, D), dtype=jnp.float32)
    r = jax.block_until_ready(fm_forward(x))
    assert r.shape == (B, n_pairs), r.shape
    assert jnp.allclose(r, reference(x), atol=1e-5, rtol=1e-5)

    # Multi-block grids: 2 blocks of 512 rows, and 3 blocks of 128 rows.
    for B2 in (1024, 384):
        x2 = jax.random.normal(jax.random.PRNGKey(1), (B2, F, D), dtype=jnp.float32)
        r2 = jax.block_until_ready(fm_forward(x2))
        assert r2.shape == (B2, n_pairs), r2.shape
        assert jnp.allclose(r2, reference(x2), atol=1e-4, rtol=1e-4)

    print("KERNEL_OK")
</pallas_src>

<mosaic_0001>
module attributes {stable_mosaic.version = 11 : i64} {
  func.func @kernel(%arg0: i32, %arg1: memref<2x256xf32, #tpu.memory_space<vmem>>, %arg2: memref<36x2xf32, #tpu.memory_space<vmem>>) attributes {dimension_semantics = [#tpu.dimension_semantics<parallel>], iteration_bounds = array<i64: 1>, scalar_prefetch = 0 : i64, scratch_operands = 0 : i64, tpu.core_type = #tpu.core_type<tc>, window_params = [{transform_indices = @transform_0, window_bounds = array<i64: 2, 256>}, {transform_indices = @transform_1, window_bounds = array<i64: 36, 2>}]} {
    %c0 = arith.constant 0 : index
    %c0_0 = arith.constant 0 : index
    %0 = vector.load %arg1[%c0, %c0_0] : memref<2x256xf32, #tpu.memory_space<vmem>>, vector<2x256xf32>
    %1 = tpu.transpose %0, [1, 0] : vector<2x256xf32> -> vector<256x2xf32>
    %2 = vector.extract_strided_slice %1 {offsets = [0, 0], sizes = [32, 2], strides = [1, 1]} : vector<256x2xf32> to vector<32x2xf32>
    %3 = vector.extract_strided_slice %1 {offsets = [0, 0], sizes = [32, 2], strides = [1, 1]} : vector<256x2xf32> to vector<32x2xf32>
    %4 = arith.mulf %2, %3 : vector<32x2xf32>
    %cst = arith.constant dense<0.000000e+00> : vector<2xf32>
    %5 = vector.multi_reduction <add>, %4, %cst [0] : vector<32x2xf32> to vector<2xf32>
    %c0_1 = arith.constant 0 : index
    %c0_2 = arith.constant 0 : index
    %6 = vector.load %arg2[%c0_1, %c0_2] : memref<36x2xf32, #tpu.memory_space<vmem>>, vector<1x2xf32>
    %7 = vector.shape_cast %6 : vector<1x2xf32> to vector<2xf32>
    %8 = vector.shape_cast %5 : vector<2xf32> to vector<1x2xf32>
    tpu.vector_store %arg2[%c0_1, %c0_2], %8 {strides = array<i32>} : memref<36x2xf32, #tpu.memory_space<vmem>>, vector<1x2xf32>,
    %9 = vector.extract_strided_slice %1 {offsets = [32, 0], sizes = [32, 2], strides = [1, 1]} : vector<256x2xf32> to vector<32x2xf32>
    %10 = arith.mulf %2, %9 : vector<32x2xf32>
    %cst_3 = arith.constant dense<0.000000e+00> : vector<2xf32>
    %11 = vector.multi_reduction <add>, %10, %cst_3 [0] : vector<32x2xf32> to vector<2xf32>
    %c1 = arith.constant 1 : index
    %c0_4 = arith.constant 0 : index
    %12 = vector.load %arg2[%c1, %c0_4] : memref<36x2xf32, #tpu.memory_space<vmem>>, vector<1x2xf32>
    %13 = vector.shape_cast %12 : vector<1x2xf32> to vector<2xf32>
    %14 = vector.shape_cast %11 : vector<2xf32> to vector<1x2xf32>
    tpu.vector_store %arg2[%c1, %c0_4], %14 {strides = array<i32>} : memref<36x2xf32, #tpu.memory_space<vmem>>, vector<1x2xf32>,
    %15 = vector.extract_strided_slice %1 {offsets = [64, 0], sizes = [32, 2], strides = [1, 1]} : vector<256x2xf32> to vector<32x2xf32>
    %16 = arith.mulf %2, %15 : vector<32x2xf32>
    %cst_5 = arith.constant dense<0.000000e+00> : vector<2xf32>
    %17 = vector.multi_reduction <add>, %16, %cst_5 [0] : vector<32x2xf32> to vector<2xf32>
    %c2 = arith.constant 2 : index
    %c0_6 = arith.constant 0 : index
    %18 = vector.load %arg2[%c2, %c0_6] : memref<36x2xf32, #tpu.memory_space<vmem>>, vector<1x2xf32>
    %19 = vector.shape_cast %18 : vector<1x2xf32> to vector<2xf32>
    %20 = vector.shape_cast %17 : vector<2xf32> to vector<1x2xf32>
    tpu.vector_store %arg2[%c2, %c0_6], %20 {strides = array<i32>} : memref<36x2xf32, #tpu.memory_space<vmem>>, vector<1x2xf32>,
    %21 = vector.extract_strided_slice %1 {offsets = [96, 0], sizes = [32, 2], strides = [1, 1]} : vector<256x2xf32> to vector<32x2xf32>
    %22 = arith.mulf %2, %21 : vector<32x2xf32>
    %cst_7 = arith.constant dense<0.000000e+00> : vector<2xf32>
    %23 = vector.multi_reduction <add>, %22, %cst_7 [0] : vector<32x2xf32> to vector<2xf32>
    %c3 = arith.constant 3 : index
    %c0_8 = arith.constant 0 : index
    %24 = vector.load %arg2[%c3, %c0_8] : memref<36x2xf32, #tpu.memory_space<vmem>>, vector<1x2xf32>
    %25 = vector.shape_cast %24 : vector<1x2xf32> to vector<2xf32>
    %26 = vector.shape_cast %23 : vector<2xf32> to vector<1x2xf32>
    tpu.vector_store %arg2[%c3, %c0_8], %26 {strides = array<i32>} : memref<36x2xf32, #tpu.memory_space<vmem>>, vector<1x2xf32>,
    %27 = vector.extract_strided_slice %1 {offsets = [128, 0], sizes = [32, 2], strides = [1, 1]} : vector<256x2xf32> to vector<32x2xf32>
    %28 = arith.mulf %2, %27 : vector<32x2xf32>
    %cst_9 = arith.constant dense<0.000000e+00> : vector<2xf32>
    %29 = vector.multi_reduction <add>, %28, %cst_9 [0] : vector<32x2xf32> to vector<2xf32>
    %c4 = arith.constant 4 : index
    %c0_10 = arith.constant 0 : index
    %30 = vector.load %arg2[%c4, %c0_10] : memref<36x2xf32, #tpu.memory_space<vmem>>, vector<1x2xf32>
    %31 = vector.shape_cast %30 : vector<1x2xf32> to vector<2xf32>
    %32 = vector.shape_cast %29 : vector<2xf32> to vector<1x2xf32>
    tpu.vector_store %arg2[%c4, %c0_10], %32 {strides = array<i32>} : memref<36x2xf32, #tpu.memory_space<vmem>>, vector<1x2xf32>,
    %33 = vector.extract_strided_slice %1 {offsets = [160, 0], sizes = [32, 2], strides = [1, 1]} : vector<256x2xf32> to vector<32x2xf32>
    %34 = arith.mulf %2, %33 : vector<32x2xf32>
    %cst_11 = arith.constant dense<0.000000e+00> : vector<2xf32>
    %35 = vector.multi_reduction <add>, %34, %cst_11 [0] : vector<32x2xf32> to vector<2xf32>
    %c5 = arith.constant 5 : index
    %c0_12 = arith.constant 0 : index
    %36 = vector.load %arg2[%c5, %c0_12] : memref<36x2xf32, #tpu.memory_space<vmem>>, vector<1x2xf32>
    %37 = vector.shape_cast %36 : vector<1x2xf32> to vector<2xf32>
    %38 = vector.shape_cast %35 : vector<2xf32> to vector<1x2xf32>
    tpu.vector_store %arg2[%c5, %c0_12], %38 {strides = array<i32>} : memref<36x2xf32, #tpu.memory_space<vmem>>, vector<1x2xf32>,
    %39 = vector.extract_strided_slice %1 {offsets = [192, 0], sizes = [32, 2], strides = [1, 1]} : vector<256x2xf32> to vector<32x2xf32>
    %40 = arith.mulf %2, %39 : vector<32x2xf32>
    %cst_13 = arith.constant dense<0.000000e+00> : vector<2xf32>
    %41 = vector.multi_reduction <add>, %40, %cst_13 [0] : vector<32x2xf32> to vector<2xf32>
    %c6 = arith.constant 6 : index
    %c0_14 = arith.constant 0 : index
    %42 = vector.load %arg2[%c6, %c0_14] : memref<36x2xf32, #tpu.memory_space<vmem>>, vector<1x2xf32>
    %43 = vector.shape_cast %42 : vector<1x2xf32> to vector<2xf32>
    %44 = vector.shape_cast %41 : vector<2xf32> to vector<1x2xf32>
    tpu.vector_store %arg2[%c6, %c0_14], %44 {strides = array<i32>} : memref<36x2xf32, #tpu.memory_space<vmem>>, vector<1x2xf32>,
    %45 = vector.extract_strided_slice %1 {offsets = [224, 0], sizes = [32, 2], strides = [1, 1]} : vector<256x2xf32> to vector<32x2xf32>
    %46 = arith.mulf %2, %45 : vector<32x2xf32>
    %cst_15 = arith.constant dense<0.000000e+00> : vector<2xf32>
    %47 = vector.multi_reduction <add>, %46, %cst_15 [0] : vector<32x2xf32> to vector<2xf32>
    %c7 = arith.constant 7 : index
    %c0_16 = arith.constant 0 : index
    %48 = vector.load %arg2[%c7, %c0_16] : memref<36x2xf32, #tpu.memory_space<vmem>>, vector<1x2xf32>
    %49 = vector.shape_cast %48 : vector<1x2xf32> to vector<2xf32>
    %50 = vector.shape_cast %47 : vector<2xf32> to vector<1x2xf32>
    tpu.vector_store %arg2[%c7, %c0_16], %50 {strides = array<i32>} : memref<36x2xf32, #tpu.memory_space<vmem>>, vector<1x2xf32>,
    %51 = vector.extract_strided_slice %1 {offsets = [32, 0], sizes = [32, 2], strides = [1, 1]} : vector<256x2xf32> to vector<32x2xf32>
    %52 = vector.extract_strided_slice %1 {offsets = [32, 0], sizes = [32, 2], strides = [1, 1]} : vector<256x2xf32> to vector<32x2xf32>
    %53 = arith.mulf %51, %52 : vector<32x2xf32>
    %cst_17 = arith.constant dense<0.000000e+00> : vector<2xf32>
    %54 = vector.multi_reduction <add>, %53, %cst_17 [0] : vector<32x2xf32> to vector<2xf32>
    %c8 = arith.constant 8 : index
    %c0_18 = arith.constant 0 : index
    %55 = vector.load %arg2[%c8, %c0_18] : memref<36x2xf32, #tpu.memory_space<vmem>>, vector<1x2xf32>
    %56 = vector.shape_cast %55 : vector<1x2xf32> to vector<2xf32>
    %57 = vector.shape_cast %54 : vector<2xf32> to vector<1x2xf32>
    tpu.vector_store %arg2[%c8, %c0_18], %57 {strides = array<i32>} : memref<36x2xf32, #tpu.memory_space<vmem>>, vector<1x2xf32>,
    %58 = vector.extract_strided_slice %1 {offsets = [64, 0], sizes = [32, 2], strides = [1, 1]} : vector<256x2xf32> to vector<32x2xf32>
    %59 = arith.mulf %51, %58 : vector<32x2xf32>
    %cst_19 = arith.constant dense<0.000000e+00> : vector<2xf32>
    %60 = vector.multi_reduction <add>, %59, %cst_19 [0] : vector<32x2xf32> to vector<2xf32>
    %c9 = arith.constant 9 : index
    %c0_20 = arith.constant 0 : index
    %61 = vector.load %arg2[%c9, %c0_20] : memref<36x2xf32, #tpu.memory_space<vmem>>, vector<1x2xf32>
    %62 = vector.shape_cast %61 : vector<1x2xf32> to vector<2xf32>
    %63 = vector.shape_cast %60 : vector<2xf32> to vector<1x2xf32>
    tpu.vector_store %arg2[%c9, %c0_20], %63 {strides = array<i32>} : memref<36x2xf32, #tpu.memory_space<vmem>>, vector<1x2xf32>,
    %64 = vector.extract_strided_slice %1 {offsets = [96, 0], sizes = [32, 2], strides = [1, 1]} : vector<256x2xf32> to vector<32x2xf32>
    %65 = arith.mulf %51, %64 : vector<32x2xf32>
    %cst_21 = arith.constant dense<0.000000e+00> : vector<2xf32>
    %66 = vector.multi_reduction <add>, %65, %cst_21 [0] : vector<32x2xf32> to vector<2xf32>
    %c10 = arith.constant 10 : index
    %c0_22 = arith.constant 0 : index
    %67 = vector.load %arg2[%c10, %c0_22] : memref<36x2xf32, #tpu.memory_space<vmem>>, vector<1x2xf32>
    %68 = vector.shape_cast %67 : vector<1x2xf32> to vector<2xf32>
    %69 = vector.shape_cast %66 : vector<2xf32> to vector<1x2xf32>
    tpu.vector_store %arg2[%c10, %c0_22], %69 {strides = array<i32>} : memref<36x2xf32, #tpu.memory_space<vmem>>, vector<1x2xf32>,
    %70 = vector.extract_strided_slice %1 {offsets = [128, 0], sizes = [32, 2], strides = [1, 1]} : vector<256x2xf32> to vector<32x2xf32>
    %71 = arith.mulf %51, %70 : vector<32x2xf32>
    %cst_23 = arith.constant dense<0.000000e+00> : vector<2xf32>
    %72 = vector.multi_reduction <add>, %71, %cst_23 [0] : vector<32x2xf32> to vector<2xf32>
    %c11 = arith.constant 11 : index
    %c0_24 = arith.constant 0 : index
    %73 = vector.load %arg2[%c11, %c0_24] : memref<36x2xf32, #tpu.memory_space<vmem>>, vector<1x2xf32>
    %74 = vector.shape_cast %73 : vector<1x2xf32> to vector<2xf32>
    %75 = vector.shape_cast %72 : vector<2xf32> to vector<1x2xf32>
    tpu.vector_store %arg2[%c11, %c0_24], %75 {strides = array<i32>} : memref<36x2xf32, #tpu.memory_space<vmem>>, vector<1x2xf32>,
    %76 = vector.extract_strided_slice %1 {offsets = [160, 0], sizes = [32, 2], strides = [1, 1]} : vector<256x2xf32> to vector<32x2xf32>
    %77 = arith.mulf %51, %76 : vector<32x2xf32>
    %cst_25 = arith.constant dense<0.000000e+00> : vector<2xf32>
    %78 = vector.multi_reduction <add>, %77, %cst_25 [0] : vector<32x2xf32> to vector<2xf32>
    %c12 = arith.constant 12 : index
    %c0_26 = arith.constant 0 : index
    %79 = vector.load %arg2[%c12, %c0_26] : memref<36x2xf32, #tpu.memory_space<vmem>>, vector<1x2xf32>
    %80 = vector.shape_cast %79 : vector<1x2xf32> to vector<2xf32>
    %81 = vector.shape_cast %78 : vector<2xf32> to vector<1x2xf32>
    tpu.vector_store %arg2[%c12, %c0_26], %81 {strides = array<i32>} : memref<36x2xf32, #tpu.memory_space<vmem>>, vector<1x2xf32>,
    %82 = vector.extract_strided_slice %1 {offsets = [192, 0], sizes = [32, 2], strides = [1, 1]} : vector<256x2xf32> to vector<32x2xf32>
    %83 = arith.mulf %51, %82 : vector<32x2xf32>
    %cst_27 = arith.constant dense<0.000000e+00> : vector<2xf32>
    %84 = vector.multi_reduction <add>, %83, %cst_27 [0] : vector<32x2xf32> to vector<2xf32>
    %c13 = arith.constant 13 : index
    %c0_28 = arith.constant 0 : index
    %85 = vector.load %arg2[%c13, %c0_28] : memref<36x2xf32, #tpu.memory_space<vmem>>, vector<1x2xf32>
    %86 = vector.shape_cast %85 : vector<1x2xf32> to vector<2xf32>
    %87 = vector.shape_cast %84 : vector<2xf32> to vector<1x2xf32>
    tpu.vector_store %arg2[%c13, %c0_28], %87 {strides = array<i32>} : memref<36x2xf32, #tpu.memory_space<vmem>>, vector<1x2xf32>,
    %88 = vector.extract_strided_slice %1 {offsets = [224, 0], sizes = [32, 2], strides = [1, 1]} : vector<256x2xf32> to vector<32x2xf32>
    %89 = arith.mulf %51, %88 : vector<32x2xf32>
    %cst_29 = arith.constant dense<0.000000e+00> : vector<2xf32>
    %90 = vector.multi_reduction <add>, %89, %cst_29 [0] : vector<32x2xf32> to vector<2xf32>
    %c14 = arith.constant 14 : index
    %c0_30 = arith.constant 0 : index
    %91 = vector.load %arg2[%c14, %c0_30] : memref<36x2xf32, #tpu.memory_space<vmem>>, vector<1x2xf32>
    %92 = vector.shape_cast %91 : vector<1x2xf32> to vector<2xf32>
    %93 = vector.shape_cast %90 : vector<2xf32> to vector<1x2xf32>
    tpu.vector_store %arg2[%c14, %c0_30], %93 {strides = array<i32>} : memref<36x2xf32, #tpu.memory_space<vmem>>, vector<1x2xf32>,
    %94 = vector.extract_strided_slice %1 {offsets = [64, 0], sizes = [32, 2], strides = [1, 1]} : vector<256x2xf32> to vector<32x2xf32>
    %95 = vector.extract_strided_slice %1 {offsets = [64, 0], sizes = [32, 2], strides = [1, 1]} : vector<256x2xf32> to vector<32x2xf32>
    %96 = arith.mulf %94, %95 : vector<32x2xf32>
    %cst_31 = arith.constant dense<0.000000e+00> : vector<2xf32>
    %97 = vector.multi_reduction <add>, %96, %cst_31 [0] : vector<32x2xf32> to vector<2xf32>
    %c15 = arith.constant 15 : index
    %c0_32 = arith.constant 0 : index
    %98 = vector.load %arg2[%c15, %c0_32] : memref<36x2xf32, #tpu.memory_space<vmem>>, vector<1x2xf32>
    %99 = vector.shape_cast %98 : vector<1x2xf32> to vector<2xf32>
    %100 = vector.shape_cast %97 : vector<2xf32> to vector<1x2xf32>
    tpu.vector_store %arg2[%c15, %c0_32], %100 {strides = array<i32>} : memref<36x2xf32, #tpu.memory_space<vmem>>, vector<1x2xf32>,
    %101 = vector.extract_strided_slice %1 {offsets = [96, 0], sizes = [32, 2], strides = [1, 1]} : vector<256x2xf32> to vector<32x2xf32>
    %102 = arith.mulf %94, %101 : vector<32x2xf32>
    %cst_33 = arith.constant dense<0.000000e+00> : vector<2xf32>
    %103 = vector.multi_reduction <add>, %102, %cst_33 [0] : vector<32x2xf32> to vector<2xf32>
    %c16 = arith.constant 16 : index
    %c0_34 = arith.constant 0 : index
    %104 = vector.load %arg2[%c16, %c0_34] : memref<36x2xf32, #tpu.memory_space<vmem>>, vector<1x2xf32>
    %105 = vector.shape_cast %104 : vector<1x2xf32> to vector<2xf32>
    %106 = vector.shape_cast %103 : vector<2xf32> to vector<1x2xf32>
    tpu.vector_store %arg2[%c16, %c0_34], %106 {strides = array<i32>} : memref<36x2xf32, #tpu.memory_space<vmem>>, vector<1x2xf32>,
    %107 = vector.extract_strided_slice %1 {offsets = [128, 0], sizes = [32, 2], strides = [1, 1]} : vector<256x2xf32> to vector<32x2xf32>
    %108 = arith.mulf %94, %107 : vector<32x2xf32>
    %cst_35 = arith.constant dense<0.000000e+00> : vector<2xf32>
    %109 = vector.multi_reduction <add>, %108, %cst_35 [0] : vector<32x2xf32> to vector<2xf32>
    %c17 = arith.constant 17 : index
    %c0_36 = arith.constant 0 : index
    %110 = vector.load %arg2[%c17, %c0_36] : memref<36x2xf32, #tpu.memory_space<vmem>>, vector<1x2xf32>
    %111 = vector.shape_cast %110 : vector<1x2xf32> to vector<2xf32>
    %112 = vector.shape_cast %109 : vector<2xf32> to vector<1x2xf32>
    tpu.vector_store %arg2[%c17, %c0_36], %112 {strides = array<i32>} : memref<36x2xf32, #tpu.memory_space<vmem>>, vector<1x2xf32>,
    %113 = vector.extract_strided_slice %1 {offsets = [160, 0], sizes = [32, 2], strides = [1, 1]} : vector<256x2xf32> to vector<32x2xf32>
    %114 = arith.mulf %94, %113 : vector<32x2xf32>
    %cst_37 = arith.constant dense<0.000000e+00> : vector<2xf32>
    %115 = vector.multi_reduction <add>, %114, %cst_37 [0] : vector<32x2xf32> to vector<2xf32>
    %c18 = arith.constant 18 : index
    %c0_38 = arith.constant 0 : index
    %116 = vector.load %arg2[%c18, %c0_38] : memref<36x2xf32, #tpu.memory_space<vmem>>, vector<1x2xf32>
    %117 = vector.shape_cast %116 : vector<1x2xf32> to vector<2xf32>
    %118 = vector.shape_cast %115 : vector<2xf32> to vector<1x2xf32>
    tpu.vector_store %arg2[%c18, %c0_38], %118 {strides = array<i32>} : memref<36x2xf32, #tpu.memory_space<vmem>>, vector<1x2xf32>,
    %119 = vector.extract_strided_slice %1 {offsets = [192, 0], sizes = [32, 2], strides = [1, 1]} : vector<256x2xf32> to vector<32x2xf32>
    %120 = arith.mulf %94, %119 : vector<32x2xf32>
    %cst_39 = arith.constant dense<0.000000e+00> : vector<2xf32>
    %121 = vector.multi_reduction <add>, %120, %cst_39 [0] : vector<32x2xf32> to vector<2xf32>
    %c19 = arith.constant 19 : index
    %c0_40 = arith.constant 0 : index
    %122 = vector.load %arg2[%c19, %c0_40] : memref<36x2xf32, #tpu.memory_space<vmem>>, vector<1x2xf32>
    %123 = vector.shape_cast %122 : vector<1x2xf32> to vector<2xf32>
    %124 = vector.shape_cast %121 : vector<2xf32> to vector<1x2xf32>
    tpu.vector_store %arg2[%c19, %c0_40], %124 {strides = array<i32>} : memref<36x2xf32, #tpu.memory_space<vmem>>, vector<1x2xf32>,
    %125 = vector.extract_strided_slice %1 {offsets = [224, 0], sizes = [32, 2], strides = [1, 1]} : vector<256x2xf32> to vector<32x2xf32>
    %126 = arith.mulf %94, %125 : vector<32x2xf32>
    %cst_41 = arith.constant dense<0.000000e+00> : vector<2xf32>
    %127 = vector.multi_reduction <add>, %126, %cst_41 [0] : vector<32x2xf32> to vector<2xf32>
    %c20 = arith.constant 20 : index
    %c0_42 = arith.constant 0 : index
    %128 = vector.load %arg2[%c20, %c0_42] : memref<36x2xf32, #tpu.memory_space<vmem>>, vector<1x2xf32>
    %129 = vector.shape_cast %128 : vector<1x2xf32> to vector<2xf32>
    %130 = vector.shape_cast %127 : vector<2xf32> to vector<1x2xf32>
    tpu.vector_store %arg2[%c20, %c0_42], %130 {strides = array<i32>} : memref<36x2xf32, #tpu.memory_space<vmem>>, vector<1x2xf32>,
    %131 = vector.extract_strided_slice %1 {offsets = [96, 0], sizes = [32, 2], strides = [1, 1]} : vector<256x2xf32> to vector<32x2xf32>
    %132 = vector.extract_strided_slice %1 {offsets = [96, 0], sizes = [32, 2], strides = [1, 1]} : vector<256x2xf32> to vector<32x2xf32>
    %133 = arith.mulf %131, %132 : vector<32x2xf32>
    %cst_43 = arith.constant dense<0.000000e+00> : vector<2xf32>
    %134 = vector.multi_reduction <add>, %133, %cst_43 [0] : vector<32x2xf32> to vector<2xf32>
    %c21 = arith.constant 21 : index
    %c0_44 = arith.constant 0 : index
    %135 = vector.load %arg2[%c21, %c0_44] : memref<36x2xf32, #tpu.memory_space<vmem>>, vector<1x2xf32>
    %136 = vector.shape_cast %135 : vector<1x2xf32> to vector<2xf32>
    %137 = vector.shape_cast %134 : vector<2xf32> to vector<1x2xf32>
    tpu.vector_store %arg2[%c21, %c0_44], %137 {strides = array<i32>} : memref<36x2xf32, #tpu.memory_space<vmem>>, vector<1x2xf32>,
    %138 = vector.extract_strided_slice %1 {offsets = [128, 0], sizes = [32, 2], strides = [1, 1]} : vector<256x2xf32> to vector<32x2xf32>
    %139 = arith.mulf %131, %138 : vector<32x2xf32>
    %cst_45 = arith.constant dense<0.000000e+00> : vector<2xf32>
    %140 = vector.multi_reduction <add>, %139, %cst_45 [0] : vector<32x2xf32> to vector<2xf32>
    %c22 = arith.constant 22 : index
    %c0_46 = arith.constant 0 : index
    %141 = vector.load %arg2[%c22, %c0_46] : memref<36x2xf32, #tpu.memory_space<vmem>>, vector<1x2xf32>
    %142 = vector.shape_cast %141 : vector<1x2xf32> to vector<2xf32>
    %143 = vector.shape_cast %140 : vector<2xf32> to vector<1x2xf32>
    tpu.vector_store %arg2[%c22, %c0_46], %143 {strides = array<i32>} : memref<36x2xf32, #tpu.memory_space<vmem>>, vector<1x2xf32>,
    %144 = vector.extract_strided_slice %1 {offsets = [160, 0], sizes = [32, 2], strides = [1, 1]} : vector<256x2xf32> to vector<32x2xf32>
    %145 = arith.mulf %131, %144 : vector<32x2xf32>
    %cst_47 = arith.constant dense<0.000000e+00> : vector<2xf32>
    %146 = vector.multi_reduction <add>, %145, %cst_47 [0] : vector<32x2xf32> to vector<2xf32>
    %c23 = arith.constant 23 : index
    %c0_48 = arith.constant 0 : index
    %147 = vector.load %arg2[%c23, %c0_48] : memref<36x2xf32, #tpu.memory_space<vmem>>, vector<1x2xf32>
    %148 = vector.shape_cast %147 : vector<1x2xf32> to vector<2xf32>
    %149 = vector.shape_cast %146 : vector<2xf32> to vector<1x2xf32>
    tpu.vector_store %arg2[%c23, %c0_48], %149 {strides = array<i32>} : memref<36x2xf32, #tpu.memory_space<vmem>>, vector<1x2xf32>,
    %150 = vector.extract_strided_slice %1 {offsets = [192, 0], sizes = [32, 2], strides = [1, 1]} : vector<256x2xf32> to vector<32x2xf32>
    %151 = arith.mulf %131, %150 : vector<32x2xf32>
    %cst_49 = arith.constant dense<0.000000e+00> : vector<2xf32>
    %152 = vector.multi_reduction <add>, %151, %cst_49 [0] : vector<32x2xf32> to vector<2xf32>
    %c24 = arith.constant 24 : index
    %c0_50 = arith.constant 0 : index
    %153 = vector.load %arg2[%c24, %c0_50] : memref<36x2xf32, #tpu.memory_space<vmem>>, vector<1x2xf32>
    %154 = vector.shape_cast %153 : vector<1x2xf32> to vector<2xf32>
    %155 = vector.shape_cast %152 : vector<2xf32> to vector<1x2xf32>
    tpu.vector_store %arg2[%c24, %c0_50], %155 {strides = array<i32>} : memref<36x2xf32, #tpu.memory_space<vmem>>, vector<1x2xf32>,
    %156 = vector.extract_strided_slice %1 {offsets = [224, 0], sizes = [32, 2], strides = [1, 1]} : vector<256x2xf32> to vector<32x2xf32>
    %157 = arith.mulf %131, %156 : vector<32x2xf32>
    %cst_51 = arith.constant dense<0.000000e+00> : vector<2xf32>
    %158 = vector.multi_reduction <add>, %157, %cst_51 [0] : vector<32x2xf32> to vector<2xf32>
    %c25 = arith.constant 25 : index
    %c0_52 = arith.constant 0 : index
    %159 = vector.load %arg2[%c25, %c0_52] : memref<36x2xf32, #tpu.memory_space<vmem>>, vector<1x2xf32>
    %160 = vector.shape_cast %159 : vector<1x2xf32> to vector<2xf32>
    %161 = vector.shape_cast %158 : vector<2xf32> to vector<1x2xf32>
    tpu.vector_store %arg2[%c25, %c0_52], %161 {strides = array<i32>} : memref<36x2xf32, #tpu.memory_space<vmem>>, vector<1x2xf32>,
    %162 = vector.extract_strided_slice %1 {offsets = [128, 0], sizes = [32, 2], strides = [1, 1]} : vector<256x2xf32> to vector<32x2xf32>
    %163 = vector.extract_strided_slice %1 {offsets = [128, 0], sizes = [32, 2], strides = [1, 1]} : vector<256x2xf32> to vector<32x2xf32>
    %164 = arith.mulf %162, %163 : vector<32x2xf32>
    %cst_53 = arith.constant dense<0.000000e+00> : vector<2xf32>
    %165 = vector.multi_reduction <add>, %164, %cst_53 [0] : vector<32x2xf32> to vector<2xf32>
    %c26 = arith.constant 26 : index
    %c0_54 = arith.constant 0 : index
    %166 = vector.load %arg2[%c26, %c0_54] : memref<36x2xf32, #tpu.memory_space<vmem>>, vector<1x2xf32>
    %167 = vector.shape_cast %166 : vector<1x2xf32> to vector<2xf32>
    %168 = vector.shape_cast %165 : vector<2xf32> to vector<1x2xf32>
    tpu.vector_store %arg2[%c26, %c0_54], %168 {strides = array<i32>} : memref<36x2xf32, #tpu.memory_space<vmem>>, vector<1x2xf32>,
    %169 = vector.extract_strided_slice %1 {offsets = [160, 0], sizes = [32, 2], strides = [1, 1]} : vector<256x2xf32> to vector<32x2xf32>
    %170 = arith.mulf %162, %169 : vector<32x2xf32>
    %cst_55 = arith.constant dense<0.000000e+00> : vector<2xf32>
    %171 = vector.multi_reduction <add>, %170, %cst_55 [0] : vector<32x2xf32> to vector<2xf32>
    %c27 = arith.constant 27 : index
    %c0_56 = arith.constant 0 : index
    %172 = vector.load %arg2[%c27, %c0_56] : memref<36x2xf32, #tpu.memory_space<vmem>>, vector<1x2xf32>
    %173 = vector.shape_cast %172 : vector<1x2xf32> to vector<2xf32>
    %174 = vector.shape_cast %171 : vector<2xf32> to vector<1x2xf32>
    tpu.vector_store %arg2[%c27, %c0_56], %174 {strides = array<i32>} : memref<36x2xf32, #tpu.memory_space<vmem>>, vector<1x2xf32>,
    %175 = vector.extract_strided_slice %1 {offsets = [192, 0], sizes = [32, 2], strides = [1, 1]} : vector<256x2xf32> to vector<32x2xf32>
    %176 = arith.mulf %162, %175 : vector<32x2xf32>
    %cst_57 = arith.constant dense<0.000000e+00> : vector<2xf32>
    %177 = vector.multi_reduction <add>, %176, %cst_57 [0] : vector<32x2xf32> to vector<2xf32>
    %c28 = arith.constant 28 : index
    %c0_58 = arith.constant 0 : index
    %178 = vector.load %arg2[%c28, %c0_58] : memref<36x2xf32, #tpu.memory_space<vmem>>, vector<1x2xf32>
    %179 = vector.shape_cast %178 : vector<1x2xf32> to vector<2xf32>
    %180 = vector.shape_cast %177 : vector<2xf32> to vector<1x2xf32>
    tpu.vector_store %arg2[%c28, %c0_58], %180 {strides = array<i32>} : memref<36x2xf32, #tpu.memory_space<vmem>>, vector<1x2xf32>,
    %181 = vector.extract_strided_slice %1 {offsets = [224, 0], sizes = [32, 2], strides = [1, 1]} : vector<256x2xf32> to vector<32x2xf32>
    %182 = arith.mulf %162, %181 : vector<32x2xf32>
    %cst_59 = arith.constant dense<0.000000e+00> : vector<2xf32>
    %183 = vector.multi_reduction <add>, %182, %cst_59 [0] : vector<32x2xf32> to vector<2xf32>
    %c29 = arith.constant 29 : index
    %c0_60 = arith.constant 0 : index
    %184 = vector.load %arg2[%c29, %c0_60] : memref<36x2xf32, #tpu.memory_space<vmem>>, vector<1x2xf32>
    %185 = vector.shape_cast %184 : vector<1x2xf32> to vector<2xf32>
    %186 = vector.shape_cast %183 : vector<2xf32> to vector<1x2xf32>
    tpu.vector_store %arg2[%c29, %c0_60], %186 {strides = array<i32>} : memref<36x2xf32, #tpu.memory_space<vmem>>, vector<1x2xf32>,
    %187 = vector.extract_strided_slice %1 {offsets = [160, 0], sizes = [32, 2], strides = [1, 1]} : vector<256x2xf32> to vector<32x2xf32>
    %188 = vector.extract_strided_slice %1 {offsets = [160, 0], sizes = [32, 2], strides = [1, 1]} : vector<256x2xf32> to vector<32x2xf32>
    %189 = arith.mulf %187, %188 : vector<32x2xf32>
    %cst_61 = arith.constant dense<0.000000e+00> : vector<2xf32>
    %190 = vector.multi_reduction <add>, %189, %cst_61 [0] : vector<32x2xf32> to vector<2xf32>
    %c30 = arith.constant 30 : index
    %c0_62 = arith.constant 0 : index
    %191 = vector.load %arg2[%c30, %c0_62] : memref<36x2xf32, #tpu.memory_space<vmem>>, vector<1x2xf32>
    %192 = vector.shape_cast %191 : vector<1x2xf32> to vector<2xf32>
    %193 = vector.shape_cast %190 : vector<2xf32> to vector<1x2xf32>
    tpu.vector_store %arg2[%c30, %c0_62], %193 {strides = array<i32>} : memref<36x2xf32, #tpu.memory_space<vmem>>, vector<1x2xf32>,
    %194 = vector.extract_strided_slice %1 {offsets = [192, 0], sizes = [32, 2], strides = [1, 1]} : vector<256x2xf32> to vector<32x2xf32>
    %195 = arith.mulf %187, %194 : vector<32x2xf32>
    %cst_63 = arith.constant dense<0.000000e+00> : vector<2xf32>
    %196 = vector.multi_reduction <add>, %195, %cst_63 [0] : vector<32x2xf32> to vector<2xf32>
    %c31 = arith.constant 31 : index
    %c0_64 = arith.constant 0 : index
    %197 = vector.load %arg2[%c31, %c0_64] : memref<36x2xf32, #tpu.memory_space<vmem>>, vector<1x2xf32>
    %198 = vector.shape_cast %197 : vector<1x2xf32> to vector<2xf32>
    %199 = vector.shape_cast %196 : vector<2xf32> to vector<1x2xf32>
    tpu.vector_store %arg2[%c31, %c0_64], %199 {strides = array<i32>} : memref<36x2xf32, #tpu.memory_space<vmem>>, vector<1x2xf32>,
    %200 = vector.extract_strided_slice %1 {offsets = [224, 0], sizes = [32, 2], strides = [1, 1]} : vector<256x2xf32> to vector<32x2xf32>
    %201 = arith.mulf %187, %200 : vector<32x2xf32>
    %cst_65 = arith.constant dense<0.000000e+00> : vector<2xf32>
    %202 = vector.multi_reduction <add>, %201, %cst_65 [0] : vector<32x2xf32> to vector<2xf32>
    %c32 = arith.constant 32 : index
    %c0_66 = arith.constant 0 : index
    %203 = vector.load %arg2[%c32, %c0_66] : memref<36x2xf32, #tpu.memory_space<vmem>>, vector<1x2xf32>
    %204 = vector.shape_cast %203 : vector<1x2xf32> to vector<2xf32>
    %205 = vector.shape_cast %202 : vector<2xf32> to vector<1x2xf32>
    tpu.vector_store %arg2[%c32, %c0_66], %205 {strides = array<i32>} : memref<36x2xf32, #tpu.memory_space<vmem>>, vector<1x2xf32>,
    %206 = vector.extract_strided_slice %1 {offsets = [192, 0], sizes = [32, 2], strides = [1, 1]} : vector<256x2xf32> to vector<32x2xf32>
    %207 = vector.extract_strided_slice %1 {offsets = [192, 0], sizes = [32, 2], strides = [1, 1]} : vector<256x2xf32> to vector<32x2xf32>
    %208 = arith.mulf %206, %207 : vector<32x2xf32>
    %cst_67 = arith.constant dense<0.000000e+00> : vector<2xf32>
    %209 = vector.multi_reduction <add>, %208, %cst_67 [0] : vector<32x2xf32> to vector<2xf32>
    %c33 = arith.constant 33 : index
    %c0_68 = arith.constant 0 : index
    %210 = vector.load %arg2[%c33, %c0_68] : memref<36x2xf32, #tpu.memory_space<vmem>>, vector<1x2xf32>
    %211 = vector.shape_cast %210 : vector<1x2xf32> to vector<2xf32>
    %212 = vector.shape_cast %209 : vector<2xf32> to vector<1x2xf32>
    tpu.vector_store %arg2[%c33, %c0_68], %212 {strides = array<i32>} : memref<36x2xf32, #tpu.memory_space<vmem>>, vector<1x2xf32>,
    %213 = vector.extract_strided_slice %1 {offsets = [224, 0], sizes = [32, 2], strides = [1, 1]} : vector<256x2xf32> to vector<32x2xf32>
    %214 = arith.mulf %206, %213 : vector<32x2xf32>
    %cst_69 = arith.constant dense<0.000000e+00> : vector<2xf32>
    %215 = vector.multi_reduction <add>, %214, %cst_69 [0] : vector<32x2xf32> to vector<2xf32>
    %c34 = arith.constant 34 : index
    %c0_70 = arith.constant 0 : index
    %216 = vector.load %arg2[%c34, %c0_70] : memref<36x2xf32, #tpu.memory_space<vmem>>, vector<1x2xf32>
    %217 = vector.shape_cast %216 : vector<1x2xf32> to vector<2xf32>
    %218 = vector.shape_cast %215 : vector<2xf32> to vector<1x2xf32>
    tpu.vector_store %arg2[%c34, %c0_70], %218 {strides = array<i32>} : memref<36x2xf32, #tpu.memory_space<vmem>>, vector<1x2xf32>,
    %219 = vector.extract_strided_slice %1 {offsets = [224, 0], sizes = [32, 2], strides = [1, 1]} : vector<256x2xf32> to vector<32x2xf32>
    %220 = vector.extract_strided_slice %1 {offsets = [224, 0], sizes = [32, 2], strides = [1, 1]} : vector<256x2xf32> to vector<32x2xf32>
    %221 = arith.mulf %219, %220 : vector<32x2xf32>
    %cst_71 = arith.constant dense<0.000000e+00> : vector<2xf32>
    %222 = vector.multi_reduction <add>, %221, %cst_71 [0] : vector<32x2xf32> to vector<2xf32>
    %c35 = arith.constant 35 : index
    %c0_72 = arith.constant 0 : index
    %223 = vector.load %arg2[%c35, %c0_72] : memref<36x2xf32, #tpu.memory_space<vmem>>, vector<1x2xf32>
    %224 = vector.shape_cast %223 : vector<1x2xf32> to vector<2xf32>
    %225 = vector.shape_cast %222 : vector<2xf32> to vector<1x2xf32>
    tpu.vector_store %arg2[%c35, %c0_72], %225 {strides = array<i32>} : memref<36x2xf32, #tpu.memory_space<vmem>>, vector<1x2xf32>,
    return
  }
  func.func @transform_0(%arg0: i32) -> (i32, i32) {
    %c0_i32 = arith.constant 0 : i32
    %c0_i32_0 = arith.constant 0 : i32
    return %arg0, %c0_i32 : i32, i32
  }
  func.func @transform_1(%arg0: i32) -> (i32, i32) {
    %c0_i32 = arith.constant 0 : i32
    %c0_i32_0 = arith.constant 0 : i32
    return %c0_i32, %arg0 : i32, i32
  }
}

</mosaic_0001>

<bundles_post_ra>
// kernel: tpu_custom_call.1
= control target key start
LH: loop header
LB: loop body
LE: loop exit
PB: predicated region body
PF: predicated region fallthrough
CT: control target
= control target key end

     0   :  { %6 = vsyncpa [#allocation3], 0  ;;  %s776_s9 = smov [#allocation2]   ;;  %s1389_s0 = inlined_call_operand.hbm [shape: f32[2,256], index: 0, kind: input, shape index: {}]   ;;  %s1390_s1 = inlined_call_operand.vmem [shape: f32[36,2], index: 1, kind: output, shape index: {}]  }
   0x1   :  { %s12_s8 = sshll.u32 %s1389_s0, 4  ;;  %s14_s10 = sshll.u32 %s776_s9, 4  ;;  %s13_s8 = int_to_ptr.hbm [resolvable:$true] %s12_s8  ;;  %s15_s10 = int_to_ptr.vmem [resolvable:$true] %s14_s10 }
   0x2   :  { %17 = dma.hbm_to_vmem [thread:$0]  %s13_s8, 64, %s15_s10, [#allocation3]  }
   0x3   :  { %774 = dma.done.wait [#allocation3], 64  }
   0x4   :  { %775 = vsyncadd [#allocation3], 4294967232  ;;  %v22_v0 = vld [vmem:[#allocation2] sm:$0xf]  ;;  %vm97_vm0 = vcmask 15360   ;;  %vm111_vm1 = vcmask 8192  }
   0x5   :  { %24 = vst [vmem:[#allocation1] ss:$4 sm:$0xff] %v22_v0 }
   0xc   :  { %v25_v1 = vld.sshfl [vmem:[#allocation1] sm:$0xff pattern:$0x73625140]  ;;  %v26_v2 = vld.sshfl [vmem:[#allocation1 + $0x8] sm:$0xff pattern:$0x73625140] }
   0xd   :  { %29 = vxpose.xlu0.b32.start.end [1/1] (short) %v25_v1, 128 }
  0x8d   :  { %61 = vxpose.xlu0.b32.start.end [1/1] (short) %v26_v2, 128 }
  0xb1   :  { %v790_v3 = vpop.trf.xlu0 }
  0xb2   :  { %v93_v7 = vmul.f32 %v790_v3, %v790_v3 }
  0xb4   :  { %v98_v10 = vsel %vm97_vm0, %v93_v7, 0.0 }
  0xb9   :  { %v792_v4 = vpop.trf.xlu0 }
  0xba   :  { %v94_v6 = vmul.f32 %v792_v4, %v792_v4 }
  0xbc   :  { %v99_v9 = vsel %vm97_vm0, %v94_v6, 0.0 }
  0xbd   :  { %v100_v12 = vadd.f32 %v99_v9, %v98_v10 }
  0xc1   :  { %v794_v5 = vpop.trf.xlu0 }
  0xc2   :  { %v95_v8 = vmul.f32 %v794_v5, %v794_v5 }
  0xc4   :  { %v101_v11 = vsel %vm97_vm0, %v95_v8, 0.0 }
  0xc5   :  { %v102_v15 = vadd.f32 %v101_v11, %v100_v12 }
  0xc9   :  { %v805_v13 = vpop.trf.xlu0 }
  0xca   :  { %v96_v14 = vmul.f32 %v805_v13, %v805_v13 }
  0xcc   :  { %v103_v16 = vsel %vm97_vm0, %v96_v14, 0.0 }
  0xcd   :  { %v104_v17 = vadd.f32 %v103_v16, %v102_v15 }
  0xcf   :  { %v105_v18 = vrot.slane %v104_v17, 4 }
  0xd1   :  { %v106_v19 = vadd.f32 %v105_v18, %v104_v17  ;;  %v810_v20 = vpop.trf.xlu0 }
  0xd2   :  { %v113_v29 = vmul.f32 %v810_v20, %v790_v3  ;;  %v239_v30 = vmul.f32 %v810_v20, %v810_v20 }
  0xd3   :  { %v107_v21 = vrot.slane %v106_v19, 2 }
  0xd4   :  { %v117_v35 = vsel %vm97_vm0, %v113_v29, 0.0  ;;  %v243_v36 = vsel %vm97_vm0, %v239_v30, 0.0 }
  0xd5   :  { %v108_v22 = vadd.f32 %v107_v21, %v106_v19 }
  0xd7   :  { %v109_v23 = vrot.slane %v108_v22, 1 }
  0xd9   :  { %v110_v24 = vadd.f32 %v109_v23, %v108_v22  ;;  %v812_v25 = vpop.trf.xlu0 }
  0xda   :  { %v114_v27 = vmul.f32 %v812_v25, %v792_v4  ;;  %v240_v28 = vmul.f32 %v812_v25, %v812_v25 }
  0xdb   :  { %112 = vst.msk [vmem:[%s1390_s1] sm:$0x1] %vm111_vm1, %v110_v24 }
  0xdc   :  { %v118_v33 = vsel %vm97_vm0, %v114_v27, 0.0  ;;  %v244_v34 = vsel %vm97_vm0, %v240_v28, 0.0 }
  0xdd   :  { %v119_v39 = vadd.f32 %v118_v33, %v117_v35  ;;  %v245_v40 = vadd.f32 %v244_v34, %v243_v36 }
  0xe1   :  { %v818_v26 = vpop.trf.xlu0 }
  0xe2   :  { %v115_v31 = vmul.f32 %v818_v26, %v794_v5  ;;  %v241_v32 = vmul.f32 %v818_v26, %v818_v26 }
  0xe4   :  { %v120_v37 = vsel %vm97_vm0, %v115_v31, 0.0  ;;  %v246_v38 = vsel %vm97_vm0, %v241_v32, 0.0 }
  0xe5   :  { %v121_v44 = vadd.f32 %v120_v37, %v119_v39  ;;  %v247_v45 = vadd.f32 %v246_v38, %v245_v40 }
  0xe9   :  { %v838_v41 = vpop.trf.xlu0 }
  0xea   :  { %v116_v42 = vmul.f32 %v838_v41, %v805_v13  ;;  %v242_v43 = vmul.f32 %v838_v41, %v838_v41 }
  0xec   :  { %v122_v46 = vsel %vm97_vm0, %v116_v42, 0.0  ;;  %v248_v47 = vsel %vm97_vm0, %v242_v43, 0.0 }
  0xed   :  { %v123_v48 = vadd.f32 %v122_v46, %v121_v44  ;;  %v249_v49 = vadd.f32 %v248_v47, %v247_v45 }
  0xef   :  { %v124_v50 = vrot.slane %v123_v48, 4  ;;  %v250_v51 = vrot.slane %v249_v49, 4 }
  0xf1   :  { %v125_v52 = vadd.f32 %v124_v50, %v123_v48  ;;  %v251_v53 = vadd.f32 %v250_v51, %v249_v49  ;;  %v846_v54 = vpop.trf.xlu0 }
  0xf2   :  { %v131_v7 = vmul.f32 %v846_v54, %v790_v3  ;;  %v257_v8 = vmul.f32 %v846_v54, %v810_v20  ;;  %v365_v9 = vmul.f32 %v846_v54, %v846_v54 }
  0xf3   :  { %v126_v55 = vrot.slane %v125_v52, 2  ;;  %v252_v56 = vrot.slane %v251_v53, 2 }
  0xf4   :  { %v135_v17 = vsel %vm97_vm0, %v131_v7, 0.0  ;;  %v261_v18 = vsel %vm97_vm0, %v257_v8, 0.0  ;;  %v369_v19 = vsel %vm97_vm0, %v365_v9, 0.0 }
  0xf5   :  { %v127_v57 = vadd.f32 %v126_v55, %v125_v52  ;;  %v253_v58 = vadd.f32 %v252_v56, %v251_v53 }
  0xf7   :  { %v128_v59 = vrot.slane %v127_v57, 1  ;;  %v254_v60 = vrot.slane %v253_v58, 1 }
  0xf9   :  { %v129_v61 = vadd.f32 %v128_v59, %v127_v57  ;;  %v255_v62 = vadd.f32 %v254_v60, %v253_v58  ;;  %v848_v63 = vpop.trf.xlu0 }
  0xfa   :  { %v132_v1 = vmul.f32 %v848_v63, %v792_v4  ;;  %v258_v2 = vmul.f32 %v848_v63, %v812_v25  ;;  %v366_v6 = vmul.f32 %v848_v63, %v848_v63 }
  0xfb   :  { %130 = vst.msk [vmem:[%s1390_s1 + $0x1] sm:$0x1] %vm111_vm1, %v129_v61 }
  0xfc   :  { %256 = vst.msk [vmem:[%s1390_s1 + $0x8] sm:$0x1] %vm111_vm1, %v255_v62  ;;  %v136_v14 = vsel %vm97_vm0, %v132_v1, 0.0  ;;  %v262_v15 = vsel %vm97_vm0, %v258_v2, 0.0  ;;  %v370_v16 = vsel %vm97_vm0, %v366_v6, 0.0 }
  0xfd   :  { %v137_v24 = vadd.f32 %v136_v14, %v135_v17  ;;  %v263_v27 = vadd.f32 %v262_v15, %v261_v18  ;;  %v371_v28 = vadd.f32 %v370_v16, %v369_v19 }
 0x101   :  { %v858_v0 = vpop.trf.xlu0 }
 0x102   :  { %v133_v10 = vmul.f32 %v858_v0, %v794_v5  ;;  %v259_v11 = vmul.f32 %v858_v0, %v818_v26  ;;  %v367_v12 = vmul.f32 %v858_v0, %v858_v0 }
 0x104   :  { %v138_v21 = vsel %vm97_vm0, %v133_v10, 0.0  ;;  %v264_v22 = vsel %vm97_vm0, %v259_v11, 0.0  ;;  %v372_v23 = vsel %vm97_vm0, %v367_v12, 0.0 }
 0x105   :  { %v139_v33 = vadd.f32 %v138_v21, %v137_v24  ;;  %v265_v34 = vadd.f32 %v264_v22, %v263_v27  ;;  %v373_v35 = vadd.f32 %v372_v23, %v371_v28 }
 0x109   :  { %v887_v29 = vpop.trf.xlu0 }
 0x10a   :  { %v134_v30 = vmul.f32 %v887_v29, %v805_v13  ;;  %v260_v31 = vmul.f32 %v887_v29, %v838_v41  ;;  %v368_v32 = vmul.f32 %v887_v29, %v887_v29 }
 0x10c   :  { %v140_v36 = vsel %vm97_vm0, %v134_v30, 0.0  ;;  %v266_v37 = vsel %vm97_vm0, %v260_v31, 0.0  ;;  %v374_v38 = vsel %vm97_vm0, %v368_v32, 0.0 }
 0x10d   :  { %v141_v39 = vadd.f32 %v140_v36, %v139_v33  ;;  %v267_v40 = vadd.f32 %v266_v37, %v265_v34  ;;  %v375_v42 = vadd.f32 %v374_v38, %v373_v35 }
 0x10f   :  { %v142_v43 = vrot.slane %v141_v39, 4  ;;  %v268_v44 = vrot.slane %v267_v40, 4  ;;  %v376_v45 = vrot.slane %v375_v42, 4 }
 0x111   :  { %v143_v46 = vadd.f32 %v142_v43, %v141_v39  ;;  %v269_v47 = vadd.f32 %v268_v44, %v267_v40  ;;  %v377_v48 = vadd.f32 %v376_v45, %v375_v42  ;;  %v898_v49 = vpop.trf.xlu0 }
 0x112   :  { %v149_v10 = vmul.f32 %v898_v49, %v790_v3  ;;  %v275_v11 = vmul.f32 %v898_v49, %v810_v20  ;;  %v383_v12 = vmul.f32 %v898_v49, %v846_v54  ;;  %v473_v14 = vmul.f32 %v898_v49, %v898_v49 }
 0x113   :  { %v144_v50 = vrot.slane %v143_v46, 2  ;;  %v270_v51 = vrot.slane %v269_v47, 2  ;;  %v378_v52 = vrot.slane %v377_v48, 2 }
 0x114   :  { %v153_v24 = vsel %vm97_vm0, %v149_v10, 0.0  ;;  %v279_v27 = vsel %vm97_vm0, %v275_v11, 0.0  ;;  %v387_v28 = vsel %vm97_vm0, %v383_v12, 0.0  ;;  %v477_v30 = vsel %vm97_vm0, %v473_v14, 0.0 }
 0x115   :  { %v145_v53 = vadd.f32 %v144_v50, %v143_v46  ;;  %v271_v55 = vadd.f32 %v270_v51, %v269_v47  ;;  %v379_v56 = vadd.f32 %v378_v52, %v377_v48 }
 0x117   :  { %v146_v57 = vrot.slane %v145_v53, 1  ;;  %v272_v58 = vrot.slane %v271_v55, 1  ;;  %v380_v59 = vrot.slane %v379_v56, 1 }
 0x119   :  { %v147_v60 = vadd.f32 %v146_v57, %v145_v53  ;;  %v273_v61 = vadd.f32 %v272_v58, %v271_v55  ;;  %v381_v62 = vadd.f32 %v380_v59, %v379_v56  ;;  %v900_v1 = vpop.trf.xlu0 }
 0x11a   :  { %v150_v6 = vmul.f32 %v900_v1, %v792_v4  ;;  %v276_v7 = vmul.f32 %v900_v1, %v812_v25  ;;  %v384_v8 = vmul.f32 %v900_v1, %v848_v63  ;;  %v474_v9 = vmul.f32 %v900_v1, %v900_v1 }
 0x11b   :  { %148 = vst.msk [vmem:[%s1390_s1 + $0x2] sm:$0x1] %vm111_vm1, %v147_v60 }
 0x11c   :  { %274 = vst.msk [vmem:[%s1390_s1 + $0x9] sm:$0x1] %vm111_vm1, %v273_v61  ;;  %v154_v19 = vsel %vm97_vm0, %v150_v6, 0.0  ;;  %v280_v21 = vsel %vm97_vm0, %v276_v7, 0.0  ;;  %v388_v22 = vsel %vm97_vm0, %v384_v8, 0.0  ;;  %v478_v23 = vsel %vm97_vm0, %v474_v9, 0.0 }
 0x11d   :  { %382 = vst.msk [vmem:[%s1390_s1 + $0xf] sm:$0x1] %vm111_vm1, %v381_v62  ;;  %v155_v35 = vadd.f32 %v154_v19, %v153_v24  ;;  %v281_v36 = vadd.f32 %v280_v21, %v279_v27  ;;  %v389_v37 = vadd.f32 %v388_v22, %v387_v28  ;;  %v479_v38 = vadd.f32 %v478_v23, %v477_v30 }
 0x121   :  { %v914_v2 = vpop.trf.xlu0 }
 0x122   :  { %v151_v15 = vmul.f32 %v914_v2, %v794_v5  ;;  %v277_v16 = vmul.f32 %v914_v2, %v818_v26  ;;  %v385_v17 = vmul.f32 %v914_v2, %v858_v0  ;;  %v475_v18 = vmul.f32 %v914_v2, %v914_v2 }
 0x124   :  { %v156_v31 = vsel %vm97_vm0, %v151_v15, 0.0  ;;  %v282_v32 = vsel %vm97_vm0, %v277_v16, 0.0  ;;  %v390_v33 = vsel %vm97_vm0, %v385_v17, 0.0  ;;  %v480_v34 = vsel %vm97_vm0, %v475_v18, 0.0 }
 0x125   :  { %v157_v45 = vadd.f32 %v156_v31, %v155_v35  ;;  %v283_v46 = vadd.f32 %v282_v32, %v281_v36  ;;  %v391_v47 = vadd.f32 %v390_v33, %v389_v37  ;;  %v481_v48 = vadd.f32 %v480_v34, %v479_v38 }
 0x129   :  { %v952_v39 = vpop.trf.xlu0 }
 0x12a   :  { %v152_v40 = vmul.f32 %v952_v39, %v805_v13  ;;  %v278_v42 = vmul.f32 %v952_v39, %v838_v41  ;;  %v386_v43 = vmul.f32 %v952_v39, %v887_v29  ;;  %v476_v44 = vmul.f32 %v952_v39, %v952_v39 }
 0x12c   :  { %v158_v50 = vsel %vm97_vm0, %v152_v40, 0.0  ;;  %v284_v51 = vsel %vm97_vm0, %v278_v42, 0.0  ;;  %v392_v52 = vsel %vm97_vm0, %v386_v43, 0.0  ;;  %v482_v53 = vsel %vm97_vm0, %v476_v44, 0.0 }
 0x12d   :  { %v159_v55 = vadd.f32 %v158_v50, %v157_v45  ;;  %v285_v56 = vadd.f32 %v284_v51, %v283_v46  ;;  %v393_v57 = vadd.f32 %v392_v52, %v391_v47  ;;  %v483_v58 = vadd.f32 %v482_v53, %v481_v48 }
 0x12f   :  { %v160_v59 = vrot.slane %v159_v55, 4  ;;  %v286_v60 = vrot.slane %v285_v56, 4  ;;  %v394_v61 = vrot.slane %v393_v57, 4  ;;  %v484_v62 = vrot.slane %v483_v58, 4 }
 0x131   :  { %v161_v6 = vadd.f32 %v160_v59, %v159_v55  ;;  %v287_v7 = vadd.f32 %v286_v60, %v285_v56  ;;  %v395_v8 = vadd.f32 %v394_v61, %v393_v57  ;;  %v485_v9 = vadd.f32 %v484_v62, %v483_v58  ;;  %v966_v10 = vpop.trf.xlu0 }
 0x132   :  { %v167_v35 = vmul.f32 %v966_v10, %v790_v3  ;;  %v293_v36 = vmul.f32 %v966_v10, %v810_v20  ;;  %v401_v37 = vmul.f32 %v966_v10, %v846_v54  ;;  %v491_v46 = vmul.f32 %v966_v10, %v898_v49 }
 0x133   :  { %v162_v11 = vrot.slane %v161_v6, 2  ;;  %v288_v12 = vrot.slane %v287_v7, 2  ;;  %v396_v14 = vrot.slane %v395_v8, 2  ;;  %v486_v15 = vrot.slane %v485_v9, 2 }
 0x134   :  { %v563_v47 = vmul.f32 %v966_v10, %v966_v10  ;;  %v171_v53 = vsel %vm97_vm0, %v167_v35, 0.0  ;;  %v297_v55 = vsel %vm97_vm0, %v293_v36, 0.0  ;;  %v405_v56 = vsel %vm97_vm0, %v401_v37, 0.0 }
 0x135   :  { %v163_v16 = vadd.f32 %v162_v11, %v161_v6  ;;  %v289_v17 = vadd.f32 %v288_v12, %v287_v7  ;;  %v397_v18 = vadd.f32 %v396_v14, %v395_v8  ;;  %v487_v19 = vadd.f32 %v486_v15, %v485_v9 }
 0x136   :  { %v495_v62 = vsel %vm97_vm0, %v491_v46, 0.0  ;;  %v567_v9 = vsel %vm97_vm0, %v563_v47, 0.0 }
 0x137   :  { %v164_v21 = vrot.slane %v163_v16, 1  ;;  %v290_v22 = vrot.slane %v289_v17, 1  ;;  %v398_v23 = vrot.slane %v397_v18, 1  ;;  %v488_v24 = vrot.slane %v487_v19, 1 }
 0x139   :  { %v165_v27 = vadd.f32 %v164_v21, %v163_v16  ;;  %v291_v28 = vadd.f32 %v290_v22, %v289_v17  ;;  %v399_v30 = vadd.f32 %v398_v23, %v397_v18  ;;  %v968_v31 = vpop.trf.xlu0  ;;  %v489_v32 = vadd.f32 %v488_v24, %v487_v19 }
 0x13a   :  { %v168_v33 = vmul.f32 %v968_v31, %v792_v4  ;;  %v294_v34 = vmul.f32 %v968_v31, %v812_v25  ;;  %v402_v38 = vmul.f32 %v968_v31, %v848_v63  ;;  %v492_v42 = vmul.f32 %v968_v31, %v900_v1 }
 0x13b   :  { %166 = vst.msk [vmem:[%s1390_s1 + $0x3] sm:$0x1] %vm111_vm1, %v165_v27  ;;  %v564_v43 = vmul.f32 %v968_v31, %v968_v31 }
 0x13c   :  { %292 = vst.msk [vmem:[%s1390_s1 + $0xa] sm:$0x1] %vm111_vm1, %v291_v28  ;;  %v172_v48 = vsel %vm97_vm0, %v168_v33, 0.0  ;;  %v298_v50 = vsel %vm97_vm0, %v294_v34, 0.0  ;;  %v406_v57 = vsel %vm97_vm0, %v402_v38, 0.0  ;;  %v496_v58 = vsel %vm97_vm0, %v492_v42, 0.0 }
 0x13d   :  { %400 = vst.msk [vmem:[%s1390_s1 + $0x10] sm:$0x1] %vm111_vm1, %v399_v30  ;;  %v568_v59 = vsel %vm97_vm0, %v564_v43, 0.0  ;;  %v173_v6 = vadd.f32 %v172_v48, %v171_v53  ;;  %v299_v7 = vadd.f32 %v298_v50, %v297_v55  ;;  %v407_v11 = vadd.f32 %v406_v57, %v405_v56 }
 0x13e   :  { %490 = vst.msk [vmem:[%s1390_s1 + $0x15] sm:$0x1] %vm111_vm1, %v489_v32  ;;  %v497_v15 = vadd.f32 %v496_v58, %v495_v62  ;;  %v569_v16 = vadd.f32 %v568_v59, %v567_v9 }
 0x141   :  { %v998_v40 = vpop.trf.xlu0 }
 0x142   :  { %v169_v44 = vmul.f32 %v998_v40, %v794_v5  ;;  %v295_v45 = vmul.f32 %v998_v40, %v818_v26  ;;  %v403_v51 = vmul.f32 %v998_v40, %v858_v0  ;;  %v493_v52 = vmul.f32 %v998_v40, %v914_v2 }
 0x143   :  { %v565_v8 = vmul.f32 %v998_v40, %v998_v40 }
 0x144   :  { %v174_v60 = vsel %vm97_vm0, %v169_v44, 0.0  ;;  %v300_v61 = vsel %vm97_vm0, %v295_v45, 0.0  ;;  %v408_v12 = vsel %vm97_vm0, %v403_v51, 0.0  ;;  %v498_v14 = vsel %vm97_vm0, %v493_v52, 0.0 }
 0x145   :  { %v175_v17 = vadd.f32 %v174_v60, %v173_v6  ;;  %v301_v18 = vadd.f32 %v300_v61, %v299_v7  ;;  %v409_v27 = vadd.f32 %v408_v12, %v407_v11  ;;  %v499_v28 = vadd.f32 %v498_v14, %v497_v15 }
 0x146   :  { %v570_v30 = vsel %vm97_vm0, %v565_v8, 0.0 }
 0x147   :  { %v571_v44 = vadd.f32 %v570_v30, %v569_v16 }
 0x149   :  { %v1032_v19 = vpop.trf.xlu0 }
 0x14a   :  { %v170_v21 = vmul.f32 %v1032_v19, %v805_v13  ;;  %v296_v22 = vmul.f32 %v1032_v19, %v838_v41  ;;  %v404_v23 = vmul.f32 %v1032_v19, %v887_v29  ;;  %v494_v24 = vmul.f32 %v1032_v19, %v952_v39 }
 0x14b   :  { %v566_v32 = vmul.f32 %v1032_v19, %v1032_v19 }
 0x14c   :  { %v176_v33 = vsel %vm97_vm0, %v170_v21, 0.0  ;;  %v302_v34 = vsel %vm97_vm0, %v296_v22, 0.0  ;;  %v410_v35 = vsel %vm97_vm0, %v404_v23, 0.0  ;;  %v500_v36 = vsel %vm97_vm0, %v494_v24, 0.0 }
 0x14d   :  { %v177_v37 = vadd.f32 %v176_v33, %v175_v17  ;;  %v303_v38 = vadd.f32 %v302_v34, %v301_v18  ;;  %v411_v42 = vadd.f32 %v410_v35, %v409_v27  ;;  %v501_v43 = vadd.f32 %v500_v36, %v499_v28 }
 0x14e   :  { %v572_v45 = vsel %vm97_vm0, %v566_v32, 0.0 }
 0x14f   :  { %v178_v46 = vrot.slane %v177_v37, 4  ;;  %v304_v47 = vrot.slane %v303_v38, 4  ;;  %v412_v48 = vrot.slane %v411_v42, 4  ;;  %v502_v50 = vrot.slane %v501_v43, 4 }
 0x150   :  { %v573_v51 = vadd.f32 %v572_v45, %v571_v44 }
 0x151   :  { %v179_v52 = vadd.f32 %v178_v46, %v177_v37  ;;  %v305_v53 = vadd.f32 %v304_v47, %v303_v38  ;;  %v413_v55 = vadd.f32 %v412_v48, %v411_v42  ;;  %v503_v56 = vadd.f32 %v502_v50, %v501_v43  ;;  %v1050_v57 = vpop.trf.xlu0 }
 0x152   :  { %v574_v58 = vrot.slane %v573_v51, 4  ;;  %v185_v34 = vmul.f32 %v1050_v57, %v790_v3  ;;  %v311_v35 = vmul.f32 %v1050_v57, %v810_v20  ;;  %v419_v36 = vmul.f32 %v1050_v57, %v846_v54 }
 0x153   :  { %v180_v59 = vrot.slane %v179_v52, 2  ;;  %v306_v60 = vrot.slane %v305_v53, 2  ;;  %v414_v61 = vrot.slane %v413_v55, 2  ;;  %v504_v62 = vrot.slane %v503_v56, 2 }
 0x154   :  { %v575_v6 = vadd.f32 %v574_v58, %v573_v51  ;;  %v509_v37 = vmul.f32 %v1050_v57, %v898_v49  ;;  %v581_v38 = vmul.f32 %v1050_v57, %v966_v10  ;;  %v635_v42 = vmul.f32 %v1050_v57, %v1050_v57 }
 0x155   :  { %v181_v7 = vadd.f32 %v180_v59, %v179_v52  ;;  %v307_v8 = vadd.f32 %v306_v60, %v305_v53  ;;  %v415_v9 = vadd.f32 %v414_v61, %v413_v55  ;;  %v505_v11 = vadd.f32 %v504_v62, %v503_v56 }
 0x156   :  { %v576_v12 = vrot.slane %v575_v6, 2  ;;  %v189_v56 = vsel %vm97_vm0, %v185_v34, 0.0  ;;  %v315_v58 = vsel %vm97_vm0, %v311_v35, 0.0  ;;  %v423_v59 = vsel %vm97_vm0, %v419_v36, 0.0 }
 0x157   :  { %v182_v14 = vrot.slane %v181_v7, 1  ;;  %v308_v15 = vrot.slane %v307_v8, 1  ;;  %v416_v16 = vrot.slane %v415_v9, 1  ;;  %v506_v17 = vrot.slane %v505_v11, 1 }
 0x158   :  { %v577_v18 = vadd.f32 %v576_v12, %v575_v6  ;;  %v513_v60 = vsel %vm97_vm0, %v509_v37, 0.0  ;;  %v585_v61 = vsel %vm97_vm0, %v581_v38, 0.0  ;;  %v639_v62 = vsel %vm97_vm0, %v635_v42, 0.0 }
 0x159   :  { %v183_v21 = vadd.f32 %v182_v14, %v181_v7  ;;  %v309_v22 = vadd.f32 %v308_v15, %v307_v8  ;;  %v417_v23 = vadd.f32 %v416_v16, %v415_v9  ;;  %v1052_v24 = vpop.trf.xlu0  ;;  %v507_v27 = vadd.f32 %v506_v17, %v505_v11 }
 0x15a   :  { %v578_v28 = vrot.slane %v577_v18, 1  ;;  %v186_v32 = vmul.f32 %v1052_v24, %v792_v4  ;;  %v312_v33 = vmul.f32 %v1052_v24, %v812_v25  ;;  %v420_v43 = vmul.f32 %v1052_v24, %v848_v63 }
 0x15b   :  { %184 = vst.msk [vmem:[%s1390_s1 + $0x4] sm:$0x1] %vm111_vm1, %v183_v21  ;;  %v510_v44 = vmul.f32 %v1052_v24, %v900_v1  ;;  %v582_v47 = vmul.f32 %v1052_v24, %v968_v31  ;;  %v636_v48 = vmul.f32 %v1052_v24, %v1052_v24 }
 0x15c   :  { %310 = vst.msk [vmem:[%s1390_s1 + $0xb] sm:$0x1] %vm111_vm1, %v309_v22  ;;  %v579_v30 = vadd.f32 %v578_v28, %v577_v18  ;;  %v190_v45 = vsel %vm97_vm0, %v186_v32, 0.0  ;;  %v316_v46 = vsel %vm97_vm0, %v312_v33, 0.0  ;;  %v424_v6 = vsel %vm97_vm0, %v420_v43, 0.0 }
 0x15d   :  { %418 = vst.msk [vmem:[%s1390_s1 + $0x11] sm:$0x1] %vm111_vm1, %v417_v23  ;;  %v514_v7 = vsel %vm97_vm0, %v510_v44, 0.0  ;;  %v191_v8 = vadd.f32 %v190_v45, %v189_v56  ;;  %v317_v9 = vadd.f32 %v316_v46, %v315_v58  ;;  %v586_v11 = vsel %vm97_vm0, %v582_v47, 0.0 }
 0x15e   :  { %508 = vst.msk [vmem:[%s1390_s1 + $0x16] sm:$0x1] %vm111_vm1, %v507_v27  ;;  %v640_v12 = vsel %vm97_vm0, %v636_v48, 0.0  ;;  %v425_v18 = vadd.f32 %v424_v6, %v423_v59  ;;  %v515_v21 = vadd.f32 %v514_v7, %v513_v60  ;;  %v587_v27 = vadd.f32 %v586_v11, %v585_v61 }
 0x15f   :  { %580 = vst.msk [vmem:[%s1390_s1 + $0x1a] sm:$0x1] %vm111_vm1, %v579_v30  ;;  %v641_v28 = vadd.f32 %v640_v12, %v639_v62 }
 0x161   :  { %v1100_v50 = vpop.trf.xlu0 }
 0x162   :  { %v187_v51 = vmul.f32 %v1100_v50, %v794_v5  ;;  %v313_v52 = vmul.f32 %v1100_v50, %v818_v26  ;;  %v421_v53 = vmul.f32 %v1100_v50, %v858_v0  ;;  %v511_v55 = vmul.f32 %v1100_v50, %v914_v2 }
 0x163   :  { %v583_v22 = vmul.f32 %v1100_v50, %v998_v40  ;;  %v637_v23 = vmul.f32 %v1100_v50, %v1100_v50 }
 0x164   :  { %v192_v14 = vsel %vm97_vm0, %v187_v51, 0.0  ;;  %v318_v15 = vsel %vm97_vm0, %v313_v52, 0.0  ;;  %v426_v16 = vsel %vm97_vm0, %v421_v53, 0.0  ;;  %v516_v17 = vsel %vm97_vm0, %v511_v55, 0.0 }
 0x165   :  { %v193_v30 = vadd.f32 %v192_v14, %v191_v8  ;;  %v319_v32 = vadd.f32 %v318_v15, %v317_v9  ;;  %v427_v33 = vadd.f32 %v426_v16, %v425_v18  ;;  %v517_v34 = vadd.f32 %v516_v17, %v515_v21 }
 0x166   :  { %v588_v43 = vsel %vm97_vm0, %v583_v22, 0.0  ;;  %v642_v44 = vsel %vm97_vm0, %v637_v23, 0.0 }
 0x167   :  { %v589_v59 = vadd.f32 %v588_v43, %v587_v27  ;;  %v643_v60 = vadd.f32 %v642_v44, %v641_v28 }
 0x169   :  { %v1128_v35 = vpop.trf.xlu0 }
 0x16a   :  { %v188_v36 = vmul.f32 %v1128_v35, %v805_v13  ;;  %v314_v37 = vmul.f32 %v1128_v35, %v838_v41  ;;  %v422_v38 = vmul.f32 %v1128_v35, %v887_v29  ;;  %v512_v42 = vmul.f32 %v1128_v35, %v952_v39 }
 0x16b   :  { %v584_v45 = vmul.f32 %v1128_v35, %v1032_v19  ;;  %v638_v46 = vmul.f32 %v1128_v35, %v1128_v35 }
 0x16c   :  { %v194_v47 = vsel %vm97_vm0, %v188_v36, 0.0  ;;  %v320_v48 = vsel %vm97_vm0, %v314_v37, 0.0  ;;  %v428_v51 = vsel %vm97_vm0, %v422_v38, 0.0  ;;  %v518_v52 = vsel %vm97_vm0, %v512_v42, 0.0 }
 0x16d   :  { %v195_v53 = vadd.f32 %v194_v47, %v193_v30  ;;  %v321_v55 = vadd.f32 %v320_v48, %v319_v32  ;;  %v429_v56 = vadd.f32 %v428_v51, %v427_v33  ;;  %v519_v58 = vadd.f32 %v518_v52, %v517_v34 }
 0x16e   :  { %v590_v61 = vsel %vm97_vm0, %v584_v45, 0.0  ;;  %v644_v62 = vsel %vm97_vm0, %v638_v46, 0.0 }
 0x16f   :  { %v196_v6 = vrot.slane %v195_v53, 4  ;;  %v322_v7 = vrot.slane %v321_v55, 4  ;;  %v430_v8 = vrot.slane %v429_v56, 4  ;;  %v520_v9 = vrot.slane %v519_v58, 4 }
 0x170   :  { %v591_v11 = vadd.f32 %v590_v61, %v589_v59  ;;  %v645_v12 = vadd.f32 %v644_v62, %v643_v60 }
 0x171   :  { %v197_v14 = vadd.f32 %v196_v6, %v195_v53  ;;  %v323_v15 = vadd.f32 %v322_v7, %v321_v55  ;;  %v431_v16 = vadd.f32 %v430_v8, %v429_v56  ;;  %v521_v17 = vadd.f32 %v520_v9, %v519_v58  ;;  %v1150_v18 = vpop.trf.xlu0 }
 0x172   :  { %v592_v21 = vrot.slane %v591_v11, 4  ;;  %v646_v22 = vrot.slane %v645_v12, 4  ;;  %v203_v61 = vmul.f32 %v1150_v18, %v790_v3  ;;  %v329_v62 = vmul.f32 %v1150_v18, %v810_v20 }
 0x173   :  { %v198_v23 = vrot.slane %v197_v14, 2  ;;  %v324_v27 = vrot.slane %v323_v15, 2  ;;  %v432_v28 = vrot.slane %v431_v16, 2  ;;  %v522_v30 = vrot.slane %v521_v17, 2 }
 0x174   :  { %v593_v32 = vadd.f32 %v592_v21, %v591_v11  ;;  %v647_v33 = vadd.f32 %v646_v22, %v645_v12  ;;  %v437_v6 = vmul.f32 %v1150_v18, %v846_v54  ;;  %v527_v11 = vmul.f32 %v1150_v18, %v898_v49 }
 0x175   :  { %v199_v34 = vadd.f32 %v198_v23, %v197_v14  ;;  %v325_v36 = vadd.f32 %v324_v27, %v323_v15  ;;  %v433_v37 = vadd.f32 %v432_v28, %v431_v16  ;;  %v523_v38 = vadd.f32 %v522_v30, %v521_v17 }
 0x176   :  { %v594_v42 = vrot.slane %v593_v32, 2  ;;  %v648_v43 = vrot.slane %v647_v33, 2  ;;  %v599_v12 = vmul.f32 %v1150_v18, %v966_v10  ;;  %v653_v14 = vmul.f32 %v1150_v18, %v1050_v57 }
 0x177   :  { %v200_v44 = vrot.slane %v199_v34, 1  ;;  %v326_v45 = vrot.slane %v325_v36, 1  ;;  %v434_v46 = vrot.slane %v433_v37, 1  ;;  %v524_v47 = vrot.slane %v523_v38, 1 }
 0x178   :  { %v595_v48 = vadd.f32 %v594_v42, %v593_v32  ;;  %v649_v51 = vadd.f32 %v648_v43, %v647_v33  ;;  %v689_v15 = vmul.f32 %v1150_v18, %v1150_v18  ;;  %v207_v21 = vsel %vm97_vm0, %v203_v61, 0.0 }
 0x179   :  { %v201_v52 = vadd.f32 %v200_v44, %v199_v34  ;;  %v327_v53 = vadd.f32 %v326_v45, %v325_v36  ;;  %v435_v55 = vadd.f32 %v434_v46, %v433_v37  ;;  %v1152_v56 = vpop.trf.xlu0  ;;  %v525_v58 = vadd.f32 %v524_v47, %v523_v38 }
 0x17a   :  { %v596_v59 = vrot.slane %v595_v48, 1  ;;  %v650_v60 = vrot.slane %v649_v51, 1  ;;  %v204_v7 = vmul.f32 %v1152_v56, %v792_v4  ;;  %v330_v16 = vmul.f32 %v1152_v56, %v812_v25 }
 0x17b   :  { %202 = vst.msk [vmem:[%s1390_s1 + $0x5] sm:$0x1] %vm111_vm1, %v201_v52  ;;  %v438_v17 = vmul.f32 %v1152_v56, %v848_v63  ;;  %v333_v22 = vsel %vm97_vm0, %v329_v62, 0.0  ;;  %v441_v23 = vsel %vm97_vm0, %v437_v6, 0.0  ;;  %v531_v28 = vsel %vm97_vm0, %v527_v11, 0.0 }
 0x17c   :  { %328 = vst.msk [vmem:[%s1390_s1 + $0xc] sm:$0x1] %vm111_vm1, %v327_v53  ;;  %v597_v8 = vadd.f32 %v596_v59, %v595_v48  ;;  %v651_v9 = vadd.f32 %v650_v60, %v649_v51  ;;  %v208_v27 = vsel %vm97_vm0, %v204_v7, 0.0  ;;  %v528_v30 = vmul.f32 %v1152_v56, %v900_v1 }
 0x17d   :  { %436 = vst.msk [vmem:[%s1390_s1 + $0x12] sm:$0x1] %vm111_vm1, %v435_v55  ;;  %v600_v32 = vmul.f32 %v1152_v56, %v968_v31  ;;  %v654_v33 = vmul.f32 %v1152_v56, %v1052_v24  ;;  %v603_v34 = vsel %vm97_vm0, %v599_v12, 0.0  ;;  %v657_v36 = vsel %vm97_vm0, %v653_v14, 0.0 }
 0x17e   :  { %526 = vst.msk [vmem:[%s1390_s1 + $0x17] sm:$0x1] %vm111_vm1, %v525_v58  ;;  %v693_v37 = vsel %vm97_vm0, %v689_v15, 0.0  ;;  %v690_v38 = vmul.f32 %v1152_v56, %v1152_v56  ;;  %v209_v43 = vadd.f32 %v208_v27, %v207_v21  ;;  %v334_v44 = vsel %vm97_vm0, %v330_v16, 0.0 }
 0x17f   :  { %598 = vst.msk [vmem:[%s1390_s1 + $0x1b] sm:$0x1] %vm111_vm1, %v597_v8  ;;  %v442_v45 = vsel %vm97_vm0, %v438_v17, 0.0  ;;  %v532_v53 = vsel %vm97_vm0, %v528_v30, 0.0  ;;  %v604_v55 = vsel %vm97_vm0, %v600_v32, 0.0  ;;  %v658_v58 = vsel %vm97_vm0, %v654_v33, 0.0 }
 0x180   :  { %652 = vst.msk [vmem:[%s1390_s1 + $0x1e] sm:$0x1] %vm111_vm1, %v651_v9  ;;  %v694_v60 = vsel %vm97_vm0, %v690_v38, 0.0  ;;  %v335_v7 = vadd.f32 %v334_v44, %v333_v22  ;;  %v443_v12 = vadd.f32 %v442_v45, %v441_v23  ;;  %v533_v14 = vadd.f32 %v532_v53, %v531_v28 }
 0x181   :  { %v1214_v42 = vpop.trf.xlu0  ;;  %v605_v15 = vadd.f32 %v604_v55, %v603_v34  ;;  %v659_v16 = vadd.f32 %v658_v58, %v657_v36  ;;  %v695_v17 = vadd.f32 %v694_v60, %v693_v37 }
 0x182   :  { %v205_v46 = vmul.f32 %v1214_v42, %v794_v5  ;;  %v331_v47 = vmul.f32 %v1214_v42, %v818_v26  ;;  %v439_v48 = vmul.f32 %v1214_v42, %v858_v0  ;;  %v529_v51 = vmul.f32 %v1214_v42, %v914_v2 }
 0x183   :  { %v601_v52 = vmul.f32 %v1214_v42, %v998_v40  ;;  %v655_v59 = vmul.f32 %v1214_v42, %v1100_v50  ;;  %v691_v6 = vmul.f32 %v1214_v42, %v1214_v42 }
 0x184   :  { %v210_v61 = vsel %vm97_vm0, %v205_v46, 0.0  ;;  %v336_v62 = vsel %vm97_vm0, %v331_v47, 0.0  ;;  %v444_v8 = vsel %vm97_vm0, %v439_v48, 0.0  ;;  %v534_v9 = vsel %vm97_vm0, %v529_v51, 0.0 }
 0x185   :  { %v606_v11 = vsel %vm97_vm0, %v601_v52, 0.0  ;;  %v211_v21 = vadd.f32 %v210_v61, %v209_v43  ;;  %v337_v27 = vadd.f32 %v336_v62, %v335_v7  ;;  %v660_v30 = vsel %vm97_vm0, %v655_v59, 0.0 }
 0x186   :  { %v445_v32 = vadd.f32 %v444_v8, %v443_v12  ;;  %v535_v33 = vadd.f32 %v534_v9, %v533_v14  ;;  %v607_v38 = vadd.f32 %v606_v11, %v605_v15  ;;  %v696_v22 = vsel %vm97_vm0, %v691_v6, 0.0 }
 0x187   :  { %v661_v36 = vadd.f32 %v660_v30, %v659_v16  ;;  %v697_v60 = vadd.f32 %v696_v22, %v695_v17 }
 0x189   :  { %v1243_v44 = vpop.trf.xlu0 }
 0x18a   :  { %v206_v46 = vmul.f32 %v1243_v44, %v805_v13  ;;  %v332_v23 = vmul.f32 %v1243_v44, %v838_v41  ;;  %v440_v28 = vmul.f32 %v1243_v44, %v887_v29  ;;  %v530_v34 = vmul.f32 %v1243_v44, %v952_v39 }
 0x18b   :  { %v602_v37 = vmul.f32 %v1243_v44, %v1032_v19  ;;  %v656_v43 = vmul.f32 %v1243_v44, %v1128_v35  ;;  %v692_v45 = vmul.f32 %v1243_v44, %v1243_v44 }
 0x18c   :  { %v212_v47 = vsel %vm97_vm0, %v206_v46, 0.0  ;;  %v338_v48 = vsel %vm97_vm0, %v332_v23, 0.0  ;;  %v446_v51 = vsel %vm97_vm0, %v440_v28, 0.0  ;;  %v536_v52 = vsel %vm97_vm0, %v530_v34, 0.0 }
 0x18d   :  { %v213_v53 = vadd.f32 %v212_v47, %v211_v21  ;;  %v339_v55 = vadd.f32 %v338_v48, %v337_v27  ;;  %v447_v58 = vadd.f32 %v446_v51, %v445_v32  ;;  %v537_v59 = vadd.f32 %v536_v52, %v535_v33 }
 0x18e   :  { %v608_v61 = vsel %vm97_vm0, %v602_v37, 0.0  ;;  %v662_v62 = vsel %vm97_vm0, %v656_v43, 0.0  ;;  %v698_v6 = vsel %vm97_vm0, %v692_v45, 0.0 }
 0x18f   :  { %v214_v7 = vrot.slane %v213_v53, 4  ;;  %v340_v8 = vrot.slane %v339_v55, 4  ;;  %v448_v9 = vrot.slane %v447_v58, 4  ;;  %v538_v11 = vrot.slane %v537_v59, 4 }
 0x190   :  { %v609_v12 = vadd.f32 %v608_v61, %v607_v38  ;;  %v663_v14 = vadd.f32 %v662_v62, %v661_v36  ;;  %v699_v15 = vadd.f32 %v698_v6, %v697_v60 }
 0x191   :  { %v215_v16 = vadd.f32 %v214_v7, %v213_v53  ;;  %v341_v30 = vadd.f32 %v340_v8, %v339_v55  ;;  %v449_v21 = vadd.f32 %v448_v9, %v447_v58  ;;  %v539_v27 = vadd.f32 %v538_v11, %v537_v59  ;;  %v89_v32 = vpop.trf.xlu0 }
 0x192   :  { %v610_v33 = vrot.slane %v609_v12, 4  ;;  %v664_v17 = vrot.slane %v663_v14, 4  ;;  %v700_v22 = vrot.slane %v699_v15, 4  ;;  %v221_v46 = vmul.f32 %v89_v32, %v790_v3 }
 0x193   :  { %v216_v23 = vrot.slane %v215_v16, 2  ;;  %v342_v28 = vrot.slane %v341_v30, 2  ;;  %v450_v34 = vrot.slane %v449_v21, 2  ;;  %v540_v37 = vrot.slane %v539_v27, 2 }
 0x194   :  { %v611_v43 = vadd.f32 %v610_v33, %v609_v12  ;;  %v665_v45 = vadd.f32 %v664_v17, %v663_v14  ;;  %v701_v47 = vadd.f32 %v700_v22, %v699_v15  ;;  %v1268_v38 = vsel %vm97_vm0, %v221_v46, 0.0 }
 0x195   :  { %v217_v36 = vadd.f32 %v216_v23, %v215_v16  ;;  %v343_v48 = vadd.f32 %v342_v28, %v341_v30  ;;  %v451_v51 = vadd.f32 %v450_v34, %v449_v21  ;;  %v541_v52 = vadd.f32 %v540_v37, %v539_v27 }
 0x196   :  { %v612_v53 = vrot.slane %v611_v43, 2  ;;  %v666_v55 = vrot.slane %v665_v45, 2  ;;  %v702_v58 = vrot.slane %v701_v47, 2  ;;  %v347_v59 = vmul.f32 %v89_v32, %v810_v20 }
 0x197   :  { %v218_v3 = vrot.slane %v217_v36, 1  ;;  %v344_v60 = vrot.slane %v343_v48, 1  ;;  %v452_v61 = vrot.slane %v451_v51, 1  ;;  %v542_v62 = vrot.slane %v541_v52, 1 }
 0x198   :  { %v613_v6 = vadd.f32 %v612_v53, %v611_v43  ;;  %v667_v7 = vadd.f32 %v666_v55, %v665_v45  ;;  %v703_v8 = vadd.f32 %v702_v58, %v701_v47  ;;  %v351_v9 = vsel %vm97_vm0, %v347_v59, 0.0 }
 0x199   :  { %v219_v11 = vadd.f32 %v218_v3, %v217_v36  ;;  %v345_v12 = vadd.f32 %v344_v60, %v343_v48  ;;  %v453_v14 = vadd.f32 %v452_v61, %v451_v51  ;;  %v543_v15 = vadd.f32 %v542_v62, %v541_v52  ;;  %v90_v16 = vpop.trf.xlu0 }
 0x19a   :  { %v614_v30 = vrot.slane %v613_v6, 1  ;;  %v668_v21 = vrot.slane %v667_v7, 1  ;;  %v704_v27 = vrot.slane %v703_v8, 1  ;;  %v455_v33 = vmul.f32 %v89_v32, %v846_v54 }
 0x19b   :  { %220 = vst.msk [vmem:[%s1390_s1 + $0x6] sm:$0x1] %vm111_vm1, %v219_v11  ;;  %v545_v20 = vmul.f32 %v89_v32, %v898_v49  ;;  %v617_v17 = vmul.f32 %v89_v32, %v966_v10  ;;  %v671_v22 = vmul.f32 %v89_v32, %v1050_v57  ;;  %v707_v46 = vmul.f32 %v89_v32, %v1150_v18 }
 0x19c   :  { %346 = vst.msk [vmem:[%s1390_s1 + $0xd] sm:$0x1] %vm111_vm1, %v345_v12  ;;  %v615_v23 = vadd.f32 %v614_v30, %v613_v6  ;;  %v669_v54 = vadd.f32 %v668_v21, %v667_v7  ;;  %v705_v28 = vadd.f32 %v704_v27, %v703_v8  ;;  %v459_v34 = vsel %vm97_vm0, %v455_v33, 0.0 }
 0x19d   :  { %454 = vst.msk [vmem:[%s1390_s1 + $0x13] sm:$0x1] %vm111_vm1, %v453_v14  ;;  %v549_v49 = vsel %vm97_vm0, %v545_v20, 0.0  ;;  %v621_v10 = vsel %vm97_vm0, %v617_v17, 0.0  ;;  %v675_v57 = vsel %vm97_vm0, %v671_v22, 0.0  ;;  %v711_v18 = vsel %vm97_vm0, %v707_v46, 0.0 }
 0x19e   :  { %544 = vst.msk [vmem:[%s1390_s1 + $0x18] sm:$0x1] %vm111_vm1, %v543_v15  ;;  %v725_v37 = vmul.f32 %v89_v32, %v89_v32  ;;  %v222_v43 = vmul.f32 %v90_v16, %v792_v4  ;;  %v348_v45 = vmul.f32 %v90_v16, %v812_v25  ;;  %v456_v47 = vmul.f32 %v90_v16, %v848_v63 }
 0x19f   :  { %616 = vst.msk [vmem:[%s1390_s1 + $0x1c] sm:$0x1] %vm111_vm1, %v615_v23  ;;  %v546_v36 = vmul.f32 %v90_v16, %v900_v1  ;;  %v618_v48 = vmul.f32 %v90_v16, %v968_v31  ;;  %v672_v51 = vmul.f32 %v90_v16, %v1052_v24  ;;  %v708_v52 = vmul.f32 %v90_v16, %v1152_v56 }
 0x1a0   :  { %670 = vst.msk [vmem:[%s1390_s1 + $0x1f] sm:$0x1] %vm111_vm1, %v669_v54  ;;  %v729_v4 = vsel %vm97_vm0, %v725_v37, 0.0  ;;  %v226_v25 = vsel %vm97_vm0, %v222_v43, 0.0  ;;  %v352_v63 = vsel %vm97_vm0, %v348_v45, 0.0  ;;  %v460_v32 = vsel %vm97_vm0, %v456_v47, 0.0 }
 0x1a1   :  { %706 = vst.msk [vmem:[%s1390_s1 + $0x21] sm:$0x1] %vm111_vm1, %v705_v28  ;;  %v550_v1 = vsel %vm97_vm0, %v546_v36, 0.0  ;;  %v622_v31 = vsel %vm97_vm0, %v618_v48, 0.0  ;;  %v676_v24 = vsel %vm97_vm0, %v672_v51, 0.0  ;;  %v712_v56 = vsel %vm97_vm0, %v708_v52, 0.0  ;;  %v91_v53 = vpop.trf.xlu0 }
 0x1a2   :  { %v726_v55 = vmul.f32 %v90_v16, %v90_v16  ;;  %v223_v58 = vmul.f32 %v91_v53, %v794_v5  ;;  %v349_v59 = vmul.f32 %v91_v53, %v818_v26  ;;  %v457_v3 = vmul.f32 %v91_v53, %v858_v0 }
 0x1a3   :  { %v547_v60 = vmul.f32 %v91_v53, %v914_v2  ;;  %v619_v61 = vmul.f32 %v91_v53, %v998_v40  ;;  %v673_v62 = vmul.f32 %v91_v53, %v1100_v50  ;;  %v709_v6 = vmul.f32 %v91_v53, %v1214_v42 }
 0x1a4   :  { %v730_v7 = vsel %vm97_vm0, %v726_v55, 0.0  ;;  %v727_v8 = vmul.f32 %v91_v53, %v91_v53  ;;  %v227_v11 = vadd.f32 %v226_v25, %v1268_v38  ;;  %v228_v12 = vsel %vm97_vm0, %v223_v58, 0.0 }
 0x1a5   :  { %v353_v5 = vadd.f32 %v352_v63, %v351_v9  ;;  %v354_v26 = vsel %vm97_vm0, %v349_v59, 0.0  ;;  %v461_v14 = vadd.f32 %v460_v32, %v459_v34  ;;  %v462_v0 = vsel %vm97_vm0, %v457_v3, 0.0 }
 0x1a6   :  { %v229_v2 = vadd.f32 %v228_v12, %v227_v11  ;;  %v551_v15 = vadd.f32 %v550_v1, %v549_v49  ;;  %v552_v40 = vsel %vm97_vm0, %v547_v60, 0.0  ;;  %v623_v50 = vadd.f32 %v622_v31, %v621_v10 }
 0x1a7   :  { %v355_v16 = vadd.f32 %v354_v26, %v353_v5  ;;  %v463_v42 = vadd.f32 %v462_v0, %v461_v14  ;;  %v624_v30 = vsel %vm97_vm0, %v619_v61, 0.0  ;;  %v677_v21 = vadd.f32 %v676_v24, %v675_v57 }
 0x1a8   :  { %v553_v27 = vadd.f32 %v552_v40, %v551_v15  ;;  %v625_v38 = vadd.f32 %v624_v30, %v623_v50  ;;  %v678_v33 = vsel %vm97_vm0, %v673_v62, 0.0  ;;  %v713_v9 = vadd.f32 %v712_v56, %v711_v18 }
 0x1a9   :  { %v679_v20 = vadd.f32 %v678_v33, %v677_v21  ;;  %v714_v17 = vsel %vm97_vm0, %v709_v6, 0.0  ;;  %v731_v22 = vadd.f32 %v730_v7, %v729_v4  ;;  %v732_v46 = vsel %vm97_vm0, %v727_v8, 0.0  ;;  %v92_v23 = vpop.trf.xlu0 }
 0x1aa   :  { %v715_v54 = vadd.f32 %v714_v17, %v713_v9  ;;  %v224_v28 = vmul.f32 %v92_v23, %v805_v13  ;;  %v350_v34 = vmul.f32 %v92_v23, %v838_v41  ;;  %v458_v49 = vmul.f32 %v92_v23, %v887_v29 }
 0x1ab   :  { %v733_v10 = vadd.f32 %v732_v46, %v731_v22  ;;  %v548_v57 = vmul.f32 %v92_v23, %v952_v39  ;;  %v620_v37 = vmul.f32 %v92_v23, %v1032_v19  ;;  %v674_v18 = vmul.f32 %v92_v23, %v1128_v35 }
 0x1ac   :  { %v230_v43 = vsel %vm97_vm0, %v224_v28, 0.0  ;;  %v356_v45 = vsel %vm97_vm0, %v350_v34, 0.0  ;;  %v464_v47 = vsel %vm97_vm0, %v458_v49, 0.0  ;;  %v710_v36 = vmul.f32 %v92_v23, %v1243_v44 }
 0x1ad   :  { %v231_v13 = vadd.f32 %v230_v43, %v229_v2  ;;  %v357_v48 = vadd.f32 %v356_v45, %v355_v16  ;;  %v465_v41 = vadd.f32 %v464_v47, %v463_v42  ;;  %v554_v29 = vsel %vm97_vm0, %v548_v57, 0.0 }
 0x1ae   :  { %v555_v51 = vadd.f32 %v554_v29, %v553_v27  ;;  %v626_v39 = vsel %vm97_vm0, %v620_v37, 0.0  ;;  %v680_v19 = vsel %vm97_vm0, %v674_v18, 0.0  ;;  %v716_v35 = vsel %vm97_vm0, %v710_v36, 0.0 }
 0x1af   :  { %v232_v52 = vrot.slane %v231_v13, 4  ;;  %v358_v4 = vrot.slane %v357_v48, 4  ;;  %v466_v25 = vrot.slane %v465_v41, 4  ;;  %v627_v63 = vadd.f32 %v626_v39, %v625_v38 }
 0x1b0   :  { %v556_v32 = vrot.slane %v555_v51, 4  ;;  %v681_v1 = vadd.f32 %v680_v19, %v679_v20  ;;  %v717_v31 = vadd.f32 %v716_v35, %v715_v54  ;;  %v728_v44 = vmul.f32 %v92_v23, %v92_v23 }
 0x1b1   :  { %v233_v24 = vadd.f32 %v232_v52, %v231_v13  ;;  %v359_v56 = vadd.f32 %v358_v4, %v357_v48  ;;  %v467_v53 = vadd.f32 %v466_v25, %v465_v41  ;;  %v628_v55 = vrot.slane %v627_v63, 4 }
 0x1b2   :  { %v557_v58 = vadd.f32 %v556_v32, %v555_v51  ;;  %v682_v59 = vrot.slane %v681_v1, 4  ;;  %v718_v3 = vrot.slane %v717_v31, 4  ;;  %v734_v60 = vsel %vm97_vm0, %v728_v44, 0.0 }
 0x1b3   :  { %v234_v61 = vrot.slane %v233_v24, 2  ;;  %v360_v62 = vrot.slane %v359_v56, 2  ;;  %v468_v6 = vrot.slane %v467_v53, 2  ;;  %v629_v7 = vadd.f32 %v628_v55, %v627_v63 }
 0x1b4   :  { %v558_v8 = vrot.slane %v557_v58, 2  ;;  %v683_v11 = vadd.f32 %v682_v59, %v681_v1  ;;  %v719_v12 = vadd.f32 %v718_v3, %v717_v31  ;;  %v735_v5 = vadd.f32 %v734_v60, %v733_v10 }
 0x1b5   :  { %v235_v26 = vadd.f32 %v234_v61, %v233_v24  ;;  %v361_v14 = vadd.f32 %v360_v62, %v359_v56  ;;  %v469_v0 = vadd.f32 %v468_v6, %v467_v53  ;;  %v630_v2 = vrot.slane %v629_v7, 2 }
 0x1b6   :  { %v559_v15 = vadd.f32 %v558_v8, %v557_v58  ;;  %v684_v40 = vrot.slane %v683_v11, 2  ;;  %v720_v50 = vrot.slane %v719_v12, 2  ;;  %v736_v16 = vrot.slane %v735_v5, 4 }
 0x1b7   :  { %v236_v42 = vrot.slane %v235_v26, 1  ;;  %v362_v30 = vrot.slane %v361_v14, 1  ;;  %v470_v21 = vrot.slane %v469_v0, 1  ;;  %v631_v27 = vadd.f32 %v630_v2, %v629_v7 }
 0x1b8   :  { %v560_v38 = vrot.slane %v559_v15, 1  ;;  %v685_v33 = vadd.f32 %v684_v40, %v683_v11  ;;  %v721_v9 = vadd.f32 %v720_v50, %v719_v12  ;;  %v737_v20 = vadd.f32 %v736_v16, %v735_v5 }
 0x1b9   :  { %v237_v17 = vadd.f32 %v236_v42, %v235_v26  ;;  %v363_v22 = vadd.f32 %v362_v30, %v361_v14  ;;  %v471_v46 = vadd.f32 %v470_v21, %v469_v0  ;;  %v632_v23 = vrot.slane %v631_v27, 1 }
 0x1ba   :  { %v561_v54 = vadd.f32 %v560_v38, %v559_v15  ;;  %v686_v28 = vrot.slane %v685_v33, 1  ;;  %v722_v34 = vrot.slane %v721_v9, 1  ;;  %v738_v49 = vrot.slane %v737_v20, 2 }
 0x1bb   :  { %238 = vst.msk [vmem:[%s1390_s1 + $0x7] sm:$0x1] %vm111_vm1, %v237_v17  ;;  %v633_v10 = vadd.f32 %v632_v23, %v631_v27 }
 0x1bc   :  { %364 = vst.msk [vmem:[%s1390_s1 + $0xe] sm:$0x1] %vm111_vm1, %v363_v22  ;;  %v687_v57 = vadd.f32 %v686_v28, %v685_v33  ;;  %v739_v37 = vadd.f32 %v738_v49, %v737_v20  ;;  %v723_v18 = vadd.f32 %v722_v34, %v721_v9 }
 0x1bd   :  { %472 = vst.msk [vmem:[%s1390_s1 + $0x14] sm:$0x1] %vm111_vm1, %v471_v46 }
 0x1be   :  { %562 = vst.msk [vmem:[%s1390_s1 + $0x19] sm:$0x1] %vm111_vm1, %v561_v54  ;;  %v740_v43 = vrot.slane %v739_v37, 1 }
 0x1bf   :  { %634 = vst.msk [vmem:[%s1390_s1 + $0x1d] sm:$0x1] %vm111_vm1, %v633_v10 }
 0x1c0   :  { %688 = vst.msk [vmem:[%s1390_s1 + $0x20] sm:$0x1] %vm111_vm1, %v687_v57  ;;  %v741_v45 = vadd.f32 %v740_v43, %v739_v37 }
 0x1c1   :  { %724 = vst.msk [vmem:[%s1390_s1 + $0x22] sm:$0x1] %vm111_vm1, %v723_v18 }
 0x1c2   :  { %742 = vst.msk [vmem:[%s1390_s1 + $0x23] sm:$0x1] %vm111_vm1, %v741_v45 }
 0x1c3   :  { %747 = vsyncpa [#allocation3], 1 }

</bundles_post_ra>
